<compile_context>
chip_gen: v7x
topology: tpu7x:2x2x1
jax: 0.10.0
libtpu: 0.0.40
codegen_flags: <defaults>
</compile_context>

<pallas_src>
import functools

import jax
import jax.numpy as jnp
from jax.experimental import pallas as pl
from jax.experimental.pallas import tpu as pltpu


def _round_up(x, m):
    return ((x + m - 1) // m) * m


def _conv_kernel(x_ref, w_ref, b_ref, o_ref, *, KH, KW, Ho, Wo, sh, sw, dh, dw):
    """One (batch element, Cout-tile) grid step.

    x_ref: (1, Hp, Wp, Cin_p)   padded NHWC image (channels lane-dense)
    w_ref: (KH, KW, Cin_p, TCo) HWIO weight tile
    b_ref: (1, TCo)             bias tile (f32)
    o_ref: (1, Ho, Wo, TCo)     NHWC output tile
    """
    cin_p = x_ref.shape[-1]
    tco = o_ref.shape[-1]
    span_h = (Ho - 1) * sh + 1
    span_w = (Wo - 1) * sw + 1

    acc = jnp.zeros((Ho * Wo, tco), jnp.float32)
    # Static, fully-unrolled loop over kernel taps: each tap is one MXU matmul.
    for kh in range(KH):
        for kw in range(KW):
            h0 = kh * dh
            w0 = kw * dw
            patch = x_ref[0, h0:h0 + span_h, w0:w0 + span_w, :]
            if sh != 1 or sw != 1:
                patch = patch[::sh, ::sw, :]
            patch = patch.reshape(Ho * Wo, cin_p)
            acc = acc + jnp.dot(patch, w_ref[kh, kw],
                                preferred_element_type=jnp.float32)

    acc = acc + b_ref[...].astype(jnp.float32)          # (1, TCo) broadcast
    o_ref[0] = acc.reshape(Ho, Wo, tco).astype(o_ref.dtype)


def meta_conv2d(x_nchw, weight, bias=None, stride=1, padding=0, dilation=1,
                groups=1):
    """Forward of MetaConv2d: F.conv2d(x, weight, bias, stride, padding,
    dilation, groups).  x_nchw: (N, Cin, H, W); weight: (Cout, Cin, KH, KW);
    bias: (Cout,) or None.  Returns (N, Cout, Ho, Wo)."""
    if isinstance(stride, int):
        stride = (stride, stride)
    if isinstance(padding, int):
        padding = (padding, padding)
    if isinstance(dilation, int):
        dilation = (dilation, dilation)
    if groups != 1:
        raise NotImplementedError("groups != 1 not supported")  # TODO(synk)

    N, Cin, H, W = x_nchw.shape
    Cout, _, KH, KW = weight.shape
    sh, sw = stride
    ph, pw = padding
    dh, dw = dilation
    Ho = (H + 2 * ph - dh * (KH - 1) - 1) // sh + 1
    Wo = (W + 2 * pw - dw * (KW - 1) - 1) // sw + 1
    Hp, Wp = H + 2 * ph, W + 2 * pw

    # Lane-dense channel padding (multiple of 128 lanes).
    cin_p = _round_up(Cin, 128)
    cout_p = _round_up(Cout, 128)
    tco = 128
    n_co = cout_p // tco

    # NCHW -> NHWC, zero-pad spatial (conv padding) + channels (lane padding).
    # (The NCHW<->NHWC transposes exist only because the PyTorch interface is
    #  NCHW; an NHWC caller would skip them entirely.)
    x = jnp.transpose(x_nchw, (0, 2, 3, 1))
    x = jnp.pad(x, ((0, 0), (ph, ph), (pw, pw), (0, cin_p - Cin)))

    # OIHW -> HWIO, pad Cin/Cout with zeros.
    w = jnp.transpose(weight, (2, 3, 1, 0)).astype(x_nchw.dtype)
    w = jnp.pad(w, ((0, 0), (0, 0), (0, cin_p - Cin), (0, cout_p - Cout)))

    if bias is None:
        b = jnp.zeros((1, cout_p), jnp.float32)
    else:
        b = jnp.pad(bias.astype(jnp.float32).reshape(1, Cout),
                    ((0, 0), (0, cout_p - Cout)))

    kernel = functools.partial(_conv_kernel, KH=KH, KW=KW, Ho=Ho, Wo=Wo,
                               sh=sh, sw=sw, dh=dh, dw=dw)

    out = pl.pallas_call(
        kernel,
        out_shape=jax.ShapeDtypeStruct((N, Ho, Wo, cout_p), x_nchw.dtype),
        grid=(N, n_co),
        in_specs=[
            # Same image block for every Cout tile (co is the inner grid axis,
            # so the block is reused without re-DMA while n is fixed).
            pl.BlockSpec((1, Hp, Wp, cin_p), lambda n, co: (n, 0, 0, 0)),
            pl.BlockSpec((KH, KW, cin_p, tco), lambda n, co: (0, 0, 0, co)),
            pl.BlockSpec((1, tco), lambda n, co: (0, co)),
        ],
        out_specs=pl.BlockSpec((1, Ho, Wo, tco), lambda n, co: (n, 0, 0, co)),
        compiler_params=pltpu.CompilerParams(
            dimension_semantics=("parallel", "parallel")),
    )(x, w, b)

    # Drop lane padding, NHWC -> NCHW.
    out = out[..., :Cout]
    return jnp.transpose(out, (0, 3, 1, 2))


def _reference(x, w, b, stride, padding, dilation):
    out = jax.lax.conv_general_dilated(
        x, w,
        window_strides=stride,
        padding=[(padding[0], padding[0]), (padding[1], padding[1])],
        rhs_dilation=dilation,
        dimension_numbers=("NCHW", "OIHW", "NCHW"),
        precision=jax.lax.Precision.HIGHEST)
    if b is not None:
        out = out + b.reshape(1, -1, 1, 1)
    return out


if __name__ == "__main__":
    key = jax.random.PRNGKey(0)
    kx, kw, kb = jax.random.split(key, 3)

    # Small shapes consistent with the module: Conv2d(4, 8, 3, padding=1).
    N, Cin, H, W = 2, 4, 16, 16
    Cout, KH, KW = 8, 3, 3
    stride, padding, dilation = (1, 1), (1, 1), (1, 1)

    x = jax.random.normal(kx, (N, Cin, H, W), dtype=jnp.float32)
    # nn.Conv2d default init: U(-1/sqrt(fan_in), 1/sqrt(fan_in)).
    fan_in = Cin * KH * KW
    bound = 1.0 / (fan_in ** 0.5)
    weight = jax.random.uniform(kw, (Cout, Cin, KH, KW), jnp.float32,
                                -bound, bound)
    bias = jax.random.uniform(kb, (Cout,), jnp.float32, -bound, bound)

    out = meta_conv2d(x, weight, bias, stride=stride, padding=padding,
                      dilation=dilation)
    jax.block_until_ready(out)

    ref = _reference(x, weight, bias, stride, padding, dilation)
    assert out.shape == (N, Cout, H, W), out.shape
    err = float(jnp.max(jnp.abs(out - ref)))
    assert err < 2e-2, f"mismatch vs reference: max abs err = {err}"

    print("KERNEL_OK")
</pallas_src>

<mosaic_0001>
module attributes {stable_mosaic.version = 11 : i64} {
  func.func @_conv_kernel(%arg0: i32, %arg1: i32, %arg2: memref<1x18x18x128xf32, #tpu.memory_space<vmem>>, %arg3: memref<3x3x128x128xf32, #tpu.memory_space<vmem>>, %arg4: memref<1x128xf32, #tpu.memory_space<vmem>>, %arg5: memref<1x16x16x128xf32, #tpu.memory_space<vmem>>) attributes {dimension_semantics = [#tpu.dimension_semantics<parallel>, #tpu.dimension_semantics<parallel>], iteration_bounds = array<i64: 2, 1>, scalar_prefetch = 0 : i64, scratch_operands = 0 : i64, tpu.core_type = #tpu.core_type<tc>, window_params = [{transform_indices = @transform_0, window_bounds = array<i64: 1, 18, 18, 128>}, {transform_indices = @transform_1, window_bounds = array<i64: 3, 3, 128, 128>}, {transform_indices = @transform_2, window_bounds = array<i64: 1, 128>}, {transform_indices = @transform_3, window_bounds = array<i64: 1, 16, 16, 128>}]} {
    %cst = arith.constant 0.000000e+00 : f32
    %0 = vector.broadcast %cst : f32 to vector<256x128xf32>
    %c0 = arith.constant 0 : index
    %c0_0 = arith.constant 0 : index
    %c0_1 = arith.constant 0 : index
    %c0_2 = arith.constant 0 : index
    %1 = vector.load %arg2[%c0, %c0_0, %c0_1, %c0_2] : memref<1x18x18x128xf32, #tpu.memory_space<vmem>>, vector<1x16x16x128xf32>
    %2 = vector.shape_cast %1 : vector<1x16x16x128xf32> to vector<16x16x128xf32>
    %3 = vector.shape_cast %2 : vector<16x16x128xf32> to vector<256x128xf32>
    %c0_3 = arith.constant 0 : index
    %c0_4 = arith.constant 0 : index
    %c0_5 = arith.constant 0 : index
    %c0_6 = arith.constant 0 : index
    %4 = vector.load %arg3[%c0_3, %c0_4, %c0_5, %c0_6] : memref<3x3x128x128xf32, #tpu.memory_space<vmem>>, vector<1x1x128x128xf32>
    %5 = vector.shape_cast %4 : vector<1x1x128x128xf32> to vector<128x128xf32>
    %cst_7 = arith.constant dense<0.000000e+00> : vector<256x128xf32>
    %6 = tpu.matmul %3, %5, %cst_7 {dimension_numbers = #tpu.dot_dimension_numbers<[1], [0], [0], [1], [0, 0, 1, 1], [], []>} : vector<256x128xf32>, vector<128x128xf32>, vector<256x128xf32> -> vector<256x128xf32>
    %7 = arith.addf %0, %6 : vector<256x128xf32>
    %c0_8 = arith.constant 0 : index
    %c0_9 = arith.constant 0 : index
    %c1 = arith.constant 1 : index
    %c0_10 = arith.constant 0 : index
    %8 = vector.load %arg2[%c0_8, %c0_9, %c1, %c0_10] : memref<1x18x18x128xf32, #tpu.memory_space<vmem>>, vector<1x16x16x128xf32>
    %9 = vector.shape_cast %8 : vector<1x16x16x128xf32> to vector<16x16x128xf32>
    %10 = vector.shape_cast %9 : vector<16x16x128xf32> to vector<256x128xf32>
    %c0_11 = arith.constant 0 : index
    %c1_12 = arith.constant 1 : index
    %c0_13 = arith.constant 0 : index
    %c0_14 = arith.constant 0 : index
    %11 = vector.load %arg3[%c0_11, %c1_12, %c0_13, %c0_14] : memref<3x3x128x128xf32, #tpu.memory_space<vmem>>, vector<1x1x128x128xf32>
    %12 = vector.shape_cast %11 : vector<1x1x128x128xf32> to vector<128x128xf32>
    %cst_15 = arith.constant dense<0.000000e+00> : vector<256x128xf32>
    %13 = tpu.matmul %10, %12, %cst_15 {dimension_numbers = #tpu.dot_dimension_numbers<[1], [0], [0], [1], [0, 0, 1, 1], [], []>} : vector<256x128xf32>, vector<128x128xf32>, vector<256x128xf32> -> vector<256x128xf32>
    %14 = arith.addf %7, %13 : vector<256x128xf32>
    %c0_16 = arith.constant 0 : index
    %c0_17 = arith.constant 0 : index
    %c2 = arith.constant 2 : index
    %c0_18 = arith.constant 0 : index
    %15 = vector.load %arg2[%c0_16, %c0_17, %c2, %c0_18] : memref<1x18x18x128xf32, #tpu.memory_space<vmem>>, vector<1x16x16x128xf32>
    %16 = vector.shape_cast %15 : vector<1x16x16x128xf32> to vector<16x16x128xf32>
    %17 = vector.shape_cast %16 : vector<16x16x128xf32> to vector<256x128xf32>
    %c0_19 = arith.constant 0 : index
    %c2_20 = arith.constant 2 : index
    %c0_21 = arith.constant 0 : index
    %c0_22 = arith.constant 0 : index
    %18 = vector.load %arg3[%c0_19, %c2_20, %c0_21, %c0_22] : memref<3x3x128x128xf32, #tpu.memory_space<vmem>>, vector<1x1x128x128xf32>
    %19 = vector.shape_cast %18 : vector<1x1x128x128xf32> to vector<128x128xf32>
    %cst_23 = arith.constant dense<0.000000e+00> : vector<256x128xf32>
    %20 = tpu.matmul %17, %19, %cst_23 {dimension_numbers = #tpu.dot_dimension_numbers<[1], [0], [0], [1], [0, 0, 1, 1], [], []>} : vector<256x128xf32>, vector<128x128xf32>, vector<256x128xf32> -> vector<256x128xf32>
    %21 = arith.addf %14, %20 : vector<256x128xf32>
    %c0_24 = arith.constant 0 : index
    %c1_25 = arith.constant 1 : index
    %c0_26 = arith.constant 0 : index
    %c0_27 = arith.constant 0 : index
    %22 = vector.load %arg2[%c0_24, %c1_25, %c0_26, %c0_27] : memref<1x18x18x128xf32, #tpu.memory_space<vmem>>, vector<1x16x16x128xf32>
    %23 = vector.shape_cast %22 : vector<1x16x16x128xf32> to vector<16x16x128xf32>
    %24 = vector.shape_cast %23 : vector<16x16x128xf32> to vector<256x128xf32>
    %c1_28 = arith.constant 1 : index
    %c0_29 = arith.constant 0 : index
    %c0_30 = arith.constant 0 : index
    %c0_31 = arith.constant 0 : index
    %25 = vector.load %arg3[%c1_28, %c0_29, %c0_30, %c0_31] : memref<3x3x128x128xf32, #tpu.memory_space<vmem>>, vector<1x1x128x128xf32>
    %26 = vector.shape_cast %25 : vector<1x1x128x128xf32> to vector<128x128xf32>
    %cst_32 = arith.constant dense<0.000000e+00> : vector<256x128xf32>
    %27 = tpu.matmul %24, %26, %cst_32 {dimension_numbers = #tpu.dot_dimension_numbers<[1], [0], [0], [1], [0, 0, 1, 1], [], []>} : vector<256x128xf32>, vector<128x128xf32>, vector<256x128xf32> -> vector<256x128xf32>
    %28 = arith.addf %21, %27 : vector<256x128xf32>
    %c0_33 = arith.constant 0 : index
    %c1_34 = arith.constant 1 : index
    %c1_35 = arith.constant 1 : index
    %c0_36 = arith.constant 0 : index
    %29 = vector.load %arg2[%c0_33, %c1_34, %c1_35, %c0_36] : memref<1x18x18x128xf32, #tpu.memory_space<vmem>>, vector<1x16x16x128xf32>
    %30 = vector.shape_cast %29 : vector<1x16x16x128xf32> to vector<16x16x128xf32>
    %31 = vector.shape_cast %30 : vector<16x16x128xf32> to vector<256x128xf32>
    %c1_37 = arith.constant 1 : index
    %c1_38 = arith.constant 1 : index
    %c0_39 = arith.constant 0 : index
    %c0_40 = arith.constant 0 : index
    %32 = vector.load %arg3[%c1_37, %c1_38, %c0_39, %c0_40] : memref<3x3x128x128xf32, #tpu.memory_space<vmem>>, vector<1x1x128x128xf32>
    %33 = vector.shape_cast %32 : vector<1x1x128x128xf32> to vector<128x128xf32>
    %cst_41 = arith.constant dense<0.000000e+00> : vector<256x128xf32>
    %34 = tpu.matmul %31, %33, %cst_41 {dimension_numbers = #tpu.dot_dimension_numbers<[1], [0], [0], [1], [0, 0, 1, 1], [], []>} : vector<256x128xf32>, vector<128x128xf32>, vector<256x128xf32> -> vector<256x128xf32>
    %35 = arith.addf %28, %34 : vector<256x128xf32>
    %c0_42 = arith.constant 0 : index
    %c1_43 = arith.constant 1 : index
    %c2_44 = arith.constant 2 : index
    %c0_45 = arith.constant 0 : index
    %36 = vector.load %arg2[%c0_42, %c1_43, %c2_44, %c0_45] : memref<1x18x18x128xf32, #tpu.memory_space<vmem>>, vector<1x16x16x128xf32>
    %37 = vector.shape_cast %36 : vector<1x16x16x128xf32> to vector<16x16x128xf32>
    %38 = vector.shape_cast %37 : vector<16x16x128xf32> to vector<256x128xf32>
    %c1_46 = arith.constant 1 : index
    %c2_47 = arith.constant 2 : index
    %c0_48 = arith.constant 0 : index
    %c0_49 = arith.constant 0 : index
    %39 = vector.load %arg3[%c1_46, %c2_47, %c0_48, %c0_49] : memref<3x3x128x128xf32, #tpu.memory_space<vmem>>, vector<1x1x128x128xf32>
    %40 = vector.shape_cast %39 : vector<1x1x128x128xf32> to vector<128x128xf32>
    %cst_50 = arith.constant dense<0.000000e+00> : vector<256x128xf32>
    %41 = tpu.matmul %38, %40, %cst_50 {dimension_numbers = #tpu.dot_dimension_numbers<[1], [0], [0], [1], [0, 0, 1, 1], [], []>} : vector<256x128xf32>, vector<128x128xf32>, vector<256x128xf32> -> vector<256x128xf32>
    %42 = arith.addf %35, %41 : vector<256x128xf32>
    %c0_51 = arith.constant 0 : index
    %c2_52 = arith.constant 2 : index
    %c0_53 = arith.constant 0 : index
    %c0_54 = arith.constant 0 : index
    %43 = vector.load %arg2[%c0_51, %c2_52, %c0_53, %c0_54] : memref<1x18x18x128xf32, #tpu.memory_space<vmem>>, vector<1x16x16x128xf32>
    %44 = vector.shape_cast %43 : vector<1x16x16x128xf32> to vector<16x16x128xf32>
    %45 = vector.shape_cast %44 : vector<16x16x128xf32> to vector<256x128xf32>
    %c2_55 = arith.constant 2 : index
    %c0_56 = arith.constant 0 : index
    %c0_57 = arith.constant 0 : index
    %c0_58 = arith.constant 0 : index
    %46 = vector.load %arg3[%c2_55, %c0_56, %c0_57, %c0_58] : memref<3x3x128x128xf32, #tpu.memory_space<vmem>>, vector<1x1x128x128xf32>
    %47 = vector.shape_cast %46 : vector<1x1x128x128xf32> to vector<128x128xf32>
    %cst_59 = arith.constant dense<0.000000e+00> : vector<256x128xf32>
    %48 = tpu.matmul %45, %47, %cst_59 {dimension_numbers = #tpu.dot_dimension_numbers<[1], [0], [0], [1], [0, 0, 1, 1], [], []>} : vector<256x128xf32>, vector<128x128xf32>, vector<256x128xf32> -> vector<256x128xf32>
    %49 = arith.addf %42, %48 : vector<256x128xf32>
    %c0_60 = arith.constant 0 : index
    %c2_61 = arith.constant 2 : index
    %c1_62 = arith.constant 1 : index
    %c0_63 = arith.constant 0 : index
    %50 = vector.load %arg2[%c0_60, %c2_61, %c1_62, %c0_63] : memref<1x18x18x128xf32, #tpu.memory_space<vmem>>, vector<1x16x16x128xf32>
    %51 = vector.shape_cast %50 : vector<1x16x16x128xf32> to vector<16x16x128xf32>
    %52 = vector.shape_cast %51 : vector<16x16x128xf32> to vector<256x128xf32>
    %c2_64 = arith.constant 2 : index
    %c1_65 = arith.constant 1 : index
    %c0_66 = arith.constant 0 : index
    %c0_67 = arith.constant 0 : index
    %53 = vector.load %arg3[%c2_64, %c1_65, %c0_66, %c0_67] : memref<3x3x128x128xf32, #tpu.memory_space<vmem>>, vector<1x1x128x128xf32>
    %54 = vector.shape_cast %53 : vector<1x1x128x128xf32> to vector<128x128xf32>
    %cst_68 = arith.constant dense<0.000000e+00> : vector<256x128xf32>
    %55 = tpu.matmul %52, %54, %cst_68 {dimension_numbers = #tpu.dot_dimension_numbers<[1], [0], [0], [1], [0, 0, 1, 1], [], []>} : vector<256x128xf32>, vector<128x128xf32>, vector<256x128xf32> -> vector<256x128xf32>
    %56 = arith.addf %49, %55 : vector<256x128xf32>
    %c0_69 = arith.constant 0 : index
    %c2_70 = arith.constant 2 : index
    %c2_71 = arith.constant 2 : index
    %c0_72 = arith.constant 0 : index
    %57 = vector.load %arg2[%c0_69, %c2_70, %c2_71, %c0_72] : memref<1x18x18x128xf32, #tpu.memory_space<vmem>>, vector<1x16x16x128xf32>
    %58 = vector.shape_cast %57 : vector<1x16x16x128xf32> to vector<16x16x128xf32>
    %59 = vector.shape_cast %58 : vector<16x16x128xf32> to vector<256x128xf32>
    %c2_73 = arith.constant 2 : index
    %c2_74 = arith.constant 2 : index
    %c0_75 = arith.constant 0 : index
    %c0_76 = arith.constant 0 : index
    %60 = vector.load %arg3[%c2_73, %c2_74, %c0_75, %c0_76] : memref<3x3x128x128xf32, #tpu.memory_space<vmem>>, vector<1x1x128x128xf32>
    %61 = vector.shape_cast %60 : vector<1x1x128x128xf32> to vector<128x128xf32>
    %cst_77 = arith.constant dense<0.000000e+00> : vector<256x128xf32>
    %62 = tpu.matmul %59, %61, %cst_77 {dimension_numbers = #tpu.dot_dimension_numbers<[1], [0], [0], [1], [0, 0, 1, 1], [], []>} : vector<256x128xf32>, vector<128x128xf32>, vector<256x128xf32> -> vector<256x128xf32>
    %63 = arith.addf %56, %62 : vector<256x128xf32>
    %c0_78 = arith.constant 0 : index
    %c0_79 = arith.constant 0 : index
    %64 = vector.load %arg4[%c0_78, %c0_79] : memref<1x128xf32, #tpu.memory_space<vmem>>, vector<1x128xf32>
    %65 = vector.broadcast %64 : vector<1x128xf32> to vector<256x128xf32>
    %66 = arith.addf %63, %65 : vector<256x128xf32>
    %67 = vector.shape_cast %66 : vector<256x128xf32> to vector<16x16x128xf32>
    %c0_80 = arith.constant 0 : index
    %c0_81 = arith.constant 0 : index
    %c0_82 = arith.constant 0 : index
    %c0_83 = arith.constant 0 : index
    %68 = vector.load %arg5[%c0_80, %c0_81, %c0_82, %c0_83] : memref<1x16x16x128xf32, #tpu.memory_space<vmem>>, vector<1x16x16x128xf32>
    %69 = vector.shape_cast %68 : vector<1x16x16x128xf32> to vector<16x16x128xf32>
    %70 = vector.shape_cast %67 : vector<16x16x128xf32> to vector<1x16x16x128xf32>
    tpu.vector_store %arg5[%c0_80, %c0_81, %c0_82, %c0_83], %70 {strides = array<i32>} : memref<1x16x16x128xf32, #tpu.memory_space<vmem>>, vector<1x16x16x128xf32>,
    return
  }
  func.func @transform_0(%arg0: i32, %arg1: i32) -> (i32, i32, i32, i32) {
    %c0_i32 = arith.constant 0 : i32
    %c0_i32_0 = arith.constant 0 : i32
    %c0_i32_1 = arith.constant 0 : i32
    %c0_i32_2 = arith.constant 0 : i32
    return %arg0, %c0_i32, %c0_i32_0, %c0_i32_1 : i32, i32, i32, i32
  }
  func.func @transform_1(%arg0: i32, %arg1: i32) -> (i32, i32, i32, i32) {
    %c0_i32 = arith.constant 0 : i32
    %c0_i32_0 = arith.constant 0 : i32
    %c0_i32_1 = arith.constant 0 : i32
    %c0_i32_2 = arith.constant 0 : i32
    return %c0_i32, %c0_i32_0, %c0_i32_1, %arg1 : i32, i32, i32, i32
  }
  func.func @transform_2(%arg0: i32, %arg1: i32) -> (i32, i32) {
    %c0_i32 = arith.constant 0 : i32
    %c0_i32_0 = arith.constant 0 : i32
    return %c0_i32, %arg1 : i32, i32
  }
  func.func @transform_3(%arg0: i32, %arg1: i32) -> (i32, i32, i32, i32) {
    %c0_i32 = arith.constant 0 : i32
    %c0_i32_0 = arith.constant 0 : i32
    %c0_i32_1 = arith.constant 0 : i32
    return %arg0, %c0_i32, %c0_i32_0, %arg1 : i32, i32, i32, i32
  }
}

</mosaic_0001>

<bundles_post_ra>
// kernel: tpu_custom_call.1
= control target key start
LH: loop header
LB: loop body
LE: loop exit
PB: predicated region body
PF: predicated region fallthrough
CT: control target
= control target key end

     0   :  { %8 = vsyncpa [#allocation3], 0  ;;  %s6513_s0 = inlined_call_operand.vmem [shape: f32[2,18,18,128], index: 0, kind: input, shape index: {}]   ;;  %s6514_s1 = inlined_call_operand.vmem [shape: f32[3,3,128,128], index: 1, kind: input, shape index: {}]   ;;  %s6515_s2 = inlined_call_operand.vmem [shape: f32[1,128], index: 2, kind: input, shape index: {}]   ;;  %s6516_s3 = inlined_call_operand.hbm [shape: f32[2,16,16,128], index: 3, kind: output, shape index: {}]  }
   0x1   :  { %10 = vsyncpa [#allocation3 + $0x1], 0  ;;  %s5299_s12 = smov 0   ;;  %s5301_s13 = smov 0  }
   0x2   :  { %s5303_s14 = smov 0   ;;  %s5305_s15 = smov 0  }
   0x3   :  { %s5307_s16 = smov 0   ;;  %s5309_s17 = smov 0  }
   0x4 LB: > { %s3090_s18 = sadd.s32 4294967295, %s5274_s17   ;;  %s3091_s19 = sadd.s32 4294967294, %s5274_s17   ;;  %s5274_s17 = sphi %s5309_s17, %s16_s17   ;;  %s5270_s16 = sphi %s5307_s16, %s6623_s16   ;;  %s5266_s15 = sphi %s5305_s15, %s6622_s15   ;;  %s5262_s14 = sphi %s5303_s14, %s6621_s14   ;;  %s5258_s13 = sphi %s5301_s13, %s6620_s13   ;;  %s5254_s12 = sphi %s5299_s12, %s6619_s12  }
   0x5   : > { %s28_s20 = sadd.s32 1, %s5270_s16  ;;  %s115_s21 = sadd.s32 1, %s5262_s14 }
   0x6   : > { %p30_p0 = scmp.ge.s32.totalorder %s28_s20, 2  ;;  %p125_p1 = scmp.ne.s32.totalorder %s5262_s14, %s5258_s13 }
   0x7   : > { %p126_p2 = scmp.eq.s32.totalorder %s3090_s18, 1  ;;  %p131_p3 = scmp.ne.s32.totalorder %s5258_s13, %s5254_s12 }
   0x8   : > { %s6625_s20 = smov (%p30_p0, %s28_s20), 0  ;;  %p132_p5 = scmp.eq.s32.totalorder %s3091_s19, 1 }
   0x9   : > { %p5339_p4 = por %p126_p2, %p125_p1  ;;  %s110_s23 = ssub.s32 %s5270_s16, %s6625_s20 }
   0xa   : > { %p3096_p6 = scmp.ge.s32.totalorder %s5274_s17, 1  ;;  %p113_p7 = scmp.eq.s32.totalorder %s110_s23, 0 }
   0xb   : > { %p5346_p8 = por %p132_p5, %p131_p3  ;;  %p171_p9 = scmp.lt.s32.totalorder %s5274_s17, 3 }
   0xc   : > { %s5352_s25 = scalar_select %p113_p7, %s5262_s14, %s115_s21  }
   0xd   : > { %p172_p10 = pnand %p3096_p6, %p171_p9 }
   0xf   : > { %175 = sbr.rel (%p172_p10) target bundleno = 574 (0x23e), region = 32 }
  0x16   : > { %v3099_v0 = vld [vmem:[%s6514_s1 + $0x80] sm:$0xff]  ;;  %v3100_v1 = vld [vmem:[%s6514_s1 + $0x88] sm:$0xff]  ;;  %p202_p11 = scmp.lt.s32.totalorder %s5266_s15, 1  ;;  %v3101_v5 = vld [vmem:[%s6514_s1 + $0x90] sm:$0xff]  ;;  %s3425_s6 = sshll.u32 %s5266_s15, 12 }
  0x17   : > { %v3211_v2 = vld [vmem:[%s6514_s1 + $0x200] sm:$0xff]  ;;  %v4578_v3 = vpack.c.bf16 %v3100_v1, %v3099_v0  ;;  %v3212_v4 = vld [vmem:[%s6514_s1 + $0x208] sm:$0xff]  ;;  %v3102_v6 = vld [vmem:[%s6514_s1 + $0x98] sm:$0xff]  ;;  %s6458_s10 = scalar_lea.hbm %s6516_s3, %s3425_s6  ;;  %s5276_s18 = smov [#allocation2]  }
  0x18   : > { %v5373_v7 = vpack.c.bf16 %v3212_v4, %v3211_v2  ;;  %v4582_v8 = vpack.c.bf16 %v3102_v6, %v3101_v5  ;;  %v3213_v9 = vld [vmem:[%s6514_s1 + $0x210] sm:$0xff]  ;;  %v3214_v10 = vld [vmem:[%s6514_s1 + $0x218] sm:$0xff]  ;;  %v3103_v11 = vld [vmem:[%s6514_s1 + $0xa0] sm:$0xff]  ;;  %s203_s27 = scalar_select %p202_p11, %s5266_s15, 1 }
  0x19   : > { %4579 = vmatprep.subr.bf16.mxu1 %v4578_v3  ;;  %v5385_v12 = vpack.c.bf16 %v3214_v10, %v3213_v9  ;;  %v3104_v13 = vld [vmem:[%s6514_s1 + $0xa8] sm:$0xff]  ;;  %v3215_v14 = vld [vmem:[%s6514_s1 + $0x220] sm:$0xff]  ;;  %v3105_v18 = vld [vmem:[%s6514_s1 + $0xb0] sm:$0xff]  ;;  %s5200_s19 = sshll.u32 %s5276_s18, 4  ;;  %s5201_s19 = int_to_ptr.vmem [resolvable:$false] %s5200_s19 }
  0x1a   : > { %v3216_v15 = vld [vmem:[%s6514_s1 + $0x228] sm:$0xff]  ;;  %4707 = vmatprep.subr.bf16.mxu0 %v5373_v7  ;;  %4581 = vmatpush3.bf16.msra.mxu1 %v4578_v3  ;;  %s5138_s7 = smul.u32 432, %s203_s27  ;;  %v4586_v16 = vpack.c.bf16 %v3104_v13, %v3103_v11  ;;  %v3106_v19 = vld [vmem:[%s6514_s1 + $0xb8] sm:$0xff]  ;;  %v3217_v20 = vld [vmem:[%s6514_s1 + $0x230] sm:$0xff]  ;;  %s5202_s21 = scalar_lea.vmem %s5201_s19, 8192 }
  0x1b   : > { %6557 = vst [vmem:[#allocation5_spill] sm:$0xff] %v5385_v12  ;;  %4709 = vmatpush3.bf16.msra.mxu0 %v5373_v7  ;;  %4583 = vmatprep.subr.bf16.mxu1 %v4582_v8  ;;  %v5399_v17 = vpack.c.bf16 %v3216_v15, %v3215_v14  ;;  %v3218_v21 = vld [vmem:[%s6514_s1 + $0x238] sm:$0xff]  ;;  %v4590_v22 = vpack.c.bf16 %v3106_v19, %v3105_v18  ;;  %v3107_v24 = vld [vmem:[%s6514_s1 + $0xc0] sm:$0xff]  ;;  %v3108_v25 = vld [vmem:[%s6514_s1 + $0xc8] sm:$0xff] }
  0x1c   : > { %4711 = vmatprep.subr.bf16.mxu0 %v5385_v12  ;;  %s5416_s28 = scalar_lea.vmem %s6513_s0, %s5138_s7  ;;  %v5420_v23 = vpack.c.bf16 %v3218_v21, %v3217_v20  ;;  %v3219_v27 = vld [vmem:[%s6514_s1 + $0x240] sm:$0xff]  ;;  %v3220_v28 = vld [vmem:[%s6514_s1 + $0x248] sm:$0xff]  ;;  %v4594_v30 = vpack.c.bf16 %v3108_v25, %v3107_v24  ;;  %v3109_v32 = vld [vmem:[%s6514_s1 + $0xd0] sm:$0xff] }
  0x1d   : > { %6558 = vst [vmem:[#allocation6_spill] sm:$0xff] %v5399_v17  ;;  %v262_v26 = vld [vmem:[%s5416_s28 + $0x1] sm:$0xff]  ;;  %v5436_v29 = vld [vmem:[%s5416_s28 + $0x19] sm:$0xff]  ;;  %v5441_v31 = vpack.c.bf16 %v3220_v28, %v3219_v27  ;;  %v3221_v34 = vld [vmem:[%s6514_s1 + $0x250] sm:$0xff] }
  0x1e   : > { %4585 = vmatpush3.bf16.msra.mxu1 %v4582_v8  ;;  %6559 = vst [vmem:[#allocation7_spill] sm:$0xff] %v5420_v23  ;;  %3890 = vmatprep.mubr.f32.mxu1 %v262_v26  ;;  %v3110_v33 = vld [vmem:[%s6514_s1 + $0xd8] sm:$0xff]  ;;  %v3111_v38 = vld [vmem:[%s6514_s1 + $0xe0] sm:$0xff]  ;;  %v3112_v39 = vld [vmem:[%s6514_s1 + $0xe8] sm:$0xff] }
  0x1f   : > { %4713 = vmatpush3.bf16.msra.mxu0 %v5385_v12  ;;  %4587 = vmatprep.subr.bf16.mxu1 %v4586_v16  ;;  %6560 = vst [vmem:[#allocation8_spill] sm:$0xff] %v5441_v31  ;;  %v3222_v35 = vld [vmem:[%s6514_s1 + $0x258] sm:$0xff]  ;;  %v4598_v36 = vpack.c.bf16 %v3110_v33, %v3109_v32  ;;  %v3223_v40 = vld [vmem:[%s6514_s1 + $0x260] sm:$0xff]  ;;  %v3224_v41 = vld [vmem:[%s6514_s1 + $0x268] sm:$0xff]  ;;  %v4602_v42 = vpack.c.bf16 %v3112_v39, %v3111_v38 }
  0x20   : > { %4715 = vmatprep.subr.bf16.mxu0 %v5399_v17  ;;  %4210 = vmatprep.mubr.f32.mxu0 %v5436_v29  ;;  %v5457_v37 = vpack.c.bf16 %v3222_v35, %v3221_v34  ;;  %v5473_v43 = vpack.c.bf16 %v3224_v41, %v3223_v40  ;;  %v3113_v44 = vld [vmem:[%s6514_s1 + $0xf0] sm:$0xff]  ;;  %v3114_v45 = vld [vmem:[%s6514_s1 + $0xf8] sm:$0xff]  ;;  %v246_v50 = vld [vmem:[%s6514_s1] sm:$0xff] }
  0x21   : > { %v3225_v46 = vld [vmem:[%s6514_s1 + $0x270] sm:$0xff]  ;;  %v3226_v47 = vld [vmem:[%s6514_s1 + $0x278] sm:$0xff]  ;;  %v4606_v48 = vpack.c.bf16 %v3114_v45, %v3113_v44  ;;  %v247_v51 = vld [vmem:[%s6514_s1 + $0x8] sm:$0xff] }
  0x22   : > { %4589 = vmatpush3.bf16.msra.mxu1 %v4586_v16  ;;  %6561 = vst [vmem:[#allocation9_spill] sm:$0xff] %v5457_v37  ;;  %6562 = vst [vmem:[#allocation10_spill] sm:$0xff] %v5473_v43  ;;  %v5489_v49 = vpack.c.bf16 %v3226_v47, %v3225_v46  ;;  %v3259_v52 = vld [vmem:[%s6514_s1 + $0x280] sm:$0xff]  ;;  %v3260_v53 = vld [vmem:[%s6514_s1 + $0x288] sm:$0xff]  ;;  %v4610_v54 = vpack.c.bf16 %v247_v51, %v246_v50 }
  0x23   : > { %4717 = vmatpush3.bf16.msra.mxu0 %v5399_v17  ;;  %4591 = vmatprep.subr.bf16.mxu1 %v4590_v22  ;;  %v4738_v55 = vpack.c.bf16 %v3260_v53, %v3259_v52  ;;  %v3261_v56 = vld [vmem:[%s6514_s1 + $0x290] sm:$0xff]  ;;  %v3262_v57 = vld [vmem:[%s6514_s1 + $0x298] sm:$0xff]  ;;  %v3180_v61 = vld [vmem:[%s5416_s28 + $0x21] sm:$0xff] }
  0x24   : > { %4719 = vmatprep.subr.bf16.mxu0 %v5420_v23  ;;  %6563 = vst [vmem:[#allocation11_spill] sm:$0xff] %v5489_v49  ;;  %v263_v58 = vld [vmem:[%s5416_s28 + $0x9] sm:$0xff]  ;;  %v249_v60 = vld [vmem:[%s6514_s1 + $0x18] sm:$0xff]  ;;  %v4742_v62 = vpack.c.bf16 %v3262_v57, %v3261_v56  ;;  %v3263_v1 = vld [vmem:[%s6514_s1 + $0x2a0] sm:$0xff] }
  0x25   : > { %v248_v59 = vld [vmem:[%s6514_s1 + $0x10] sm:$0xff]  ;;  %v3264_v2 = vld [vmem:[%s6514_s1 + $0x2a8] sm:$0xff]  ;;  %v250_v3 = vld [vmem:[%s6514_s1 + $0x20] sm:$0xff] }
  0x26   : > { %4593 = vmatpush3.bf16.msra.mxu1 %v4590_v22  ;;  %v3181_v63 = vld [vmem:[%s5416_s28 + $0x31] sm:$0xff]  ;;  %v4614_v0 = vpack.c.bf16 %v249_v60, %v248_v59  ;;  %v251_v4 = vld [vmem:[%s6514_s1 + $0x28] sm:$0xff]  ;;  %v3182_v5 = vld [vmem:[%s5416_s28 + $0x39] sm:$0xff]  ;;  %v4746_v8 = vpack.c.bf16 %v3264_v2, %v3263_v1 }
  0x27   : > { %4721 = vmatpush3.bf16.msra.mxu0 %v5420_v23  ;;  %4595 = vmatprep.subr.bf16.mxu1 %v4594_v30  ;;  %v3183_v6 = vld [vmem:[%s5416_s28 + $0x49] sm:$0xff]  ;;  %v3266_v10 = vld [vmem:[%s6514_s1 + $0x2b8] sm:$0xff]  ;;  %v4618_v11 = vpack.c.bf16 %v251_v4, %v250_v3  ;;  %v3185_v16 = vld [vmem:[%s5416_s28 + $0x61] sm:$0xff] }
  0x28   : > { %4723 = vmatprep.subr.bf16.mxu0 %v5441_v31  ;;  %v3265_v9 = vld [vmem:[%s6514_s1 + $0x2b0] sm:$0xff]  ;;  %v253_v14 = vld [vmem:[%s6514_s1 + $0x38] sm:$0xff]  ;;  %v3267_v19 = vld [vmem:[%s6514_s1 + $0x2c0] sm:$0xff] }
  0x29   : > { %v252_v13 = vld [vmem:[%s6514_s1 + $0x30] sm:$0xff]  ;;  %v4750_v18 = vpack.c.bf16 %v3266_v10, %v3265_v9  ;;  %v3268_v20 = vld [vmem:[%s6514_s1 + $0x2c8] sm:$0xff]  ;;  %v254_v22 = vld [vmem:[%s6514_s1 + $0x40] sm:$0xff] }
  0x2a   : > { %4597 = vmatpush3.bf16.msra.mxu1 %v4594_v30  ;;  %v3184_v15 = vld [vmem:[%s5416_s28 + $0x51] sm:$0xff]  ;;  %v4622_v21 = vpack.c.bf16 %v253_v14, %v252_v13  ;;  %v255_v24 = vld [vmem:[%s6514_s1 + $0x48] sm:$0xff]  ;;  %v3187_v26 = vld [vmem:[%s5416_s28 + $0x79] sm:$0xff]  ;;  %v4754_v27 = vpack.c.bf16 %v3268_v20, %v3267_v19 }
  0x2b   : > { %4725 = vmatpush3.bf16.msra.mxu0 %v5441_v31  ;;  %4599 = vmatprep.subr.bf16.mxu1 %v4598_v36  ;;  %v3186_v25 = vld [vmem:[%s5416_s28 + $0x69] sm:$0xff]  ;;  %v4626_v30 = vpack.c.bf16 %v255_v24, %v254_v22  ;;  %v257_v33 = vld [vmem:[%s6514_s1 + $0x58] sm:$0xff]  ;;  %v3188_v34 = vld [vmem:[%s5416_s28 + $0x81] sm:$0xff] }
  0x2c   : > { %4727 = vmatprep.subr.bf16.mxu0 %v5457_v37  ;;  %v3269_v28 = vld [vmem:[%s6514_s1 + $0x2d0] sm:$0xff]  ;;  %v3271_v38 = vld [vmem:[%s6514_s1 + $0x2e0] sm:$0xff]  ;;  %v3272_v39 = vld [vmem:[%s6514_s1 + $0x2e8] sm:$0xff] }
  0x2d   : > { %v256_v32 = vld [vmem:[%s6514_s1 + $0x50] sm:$0xff]  ;;  %v258_v41 = vld [vmem:[%s6514_s1 + $0x60] sm:$0xff]  ;;  %v4762_v46 = vpack.c.bf16 %v3272_v39, %v3271_v38  ;;  %v261_v52 = vld [vmem:[%s6514_s1 + $0x78] sm:$0xff] }
  0x2e   : > { %4601 = vmatpush3.bf16.msra.mxu1 %v4598_v36  ;;  %v5578_v35 = vld [vmem:[%s5416_s28 + $0x91] sm:$0xff]  ;;  %v4630_v40 = vpack.c.bf16 %v257_v33, %v256_v32  ;;  %v3190_v44 = vld [vmem:[%s5416_s28 + $0x99] sm:$0xff]  ;;  %v3191_v45 = vld [vmem:[%s5416_s28 + $0xa9] sm:$0xff] }
  0x2f   : > { %4729 = vmatpush3.bf16.msra.mxu0 %v5457_v37  ;;  %4603 = vmatprep.subr.bf16.mxu1 %v4602_v42  ;;  %v3273_v47 = vld [vmem:[%s6514_s1 + $0x2f0] sm:$0xff]  ;;  %v3307_v56 = vld [vmem:[%s6514_s1 + $0x300] sm:$0xff]  ;;  %v3308_v57 = vld [vmem:[%s6514_s1 + $0x308] sm:$0xff] }
  0x30   : > { %4731 = vmatprep.subr.bf16.mxu0 %v5473_v43  ;;  %v260_v51 = vld [vmem:[%s6514_s1 + $0x70] sm:$0xff]  ;;  %v3115_v59 = vld [vmem:[%s6514_s1 + $0x100] sm:$0xff]  ;;  %v3116_v60 = vld [vmem:[%s6514_s1 + $0x108] sm:$0xff] }
  0x31   : > { %v3192_v53 = vld [vmem:[%s5416_s28 + $0xb1] sm:$0xff]  ;;  %v5637_v2 = vpack.c.bf16 %v3116_v60, %v3115_v59  ;;  %v5643_v3 = vld [vmem:[%s5416_s28 + $0x22] sm:$0xff]  ;;  %v5646_v4 = vld [vmem:[%s5416_s28 + $0xd9] sm:$0xff] }
  0x32   : > { %4605 = vmatpush3.bf16.msra.mxu1 %v4602_v42  ;;  %v259_v42 = vld [vmem:[%s6514_s1 + $0x68] sm:$0xff]  ;;  %v3310_v1 = vld [vmem:[%s6514_s1 + $0x318] sm:$0xff]  ;;  %v3317_v33 = vld [vmem:[%s6514_s1 + $0x350] sm:$0xff] }
  0x33   : > { %4733 = vmatpush3.bf16.msra.mxu0 %v5473_v43  ;;  %4607 = vmatprep.subr.bf16.mxu1 %v4606_v48  ;;  %v4634_v50 = vpack.c.bf16 %v259_v42, %v258_v41  ;;  %v3312_v9 = vld [vmem:[%s6514_s1 + $0x328] sm:$0xff]  ;;  %v5669_v13 = vld [vmem:[%s5416_s28 + $0xf1] sm:$0xff]  ;;  %v5684_v19 = vld [vmem:[%s5416_s28 + $0xf9] sm:$0xff] }
  0x34   : > { %4735 = vmatprep.subr.bf16.mxu0 %v5489_v49  ;;  %v5662_v10 = vld [vmem:[%s5416_s28 + $0xe1] sm:$0xff]  ;;  %v5672_v14 = vld [vmem:[%s5416_s28 + $0x4a] sm:$0xff]  ;;  %v5688_v20 = vld [vmem:[%s5416_s28 + $0x52] sm:$0xff] }
  0x35   : > { %v5694_v22 = vld [vmem:[%s5416_s28 + $0x62] sm:$0xff]  ;;  %v5735_v39 = vld [vmem:[%s5416_s28 + $0x139] sm:$0xff] }
  0x36   : > { %4609 = vmatpush3.bf16.msra.mxu1 %v4606_v48  ;;  %v3274_v48 = vld [vmem:[%s6514_s1 + $0x2f8] sm:$0xff]  ;;  %v5732_v38 = vld [vmem:[%s5416_s28 + $0x82] sm:$0xff]  ;;  %6568 = vst [vmem:[#allocation16_spill] sm:$0xff] %v5735_v39 }
  0x37   : > { %4737 = vmatpush3.bf16.msra.mxu0 %v5489_v49  ;;  %4611 = vmatprep.subr.bf16.mxu1 %v4610_v54  ;;  %v3319_v42 = vld [vmem:[%s6514_s1 + $0x360] sm:$0xff]  ;;  %v3356_v60 = vld [vmem:[%s6514_s1 + $0x388] sm:$0xff]  ;;  %v3126_v49 = vld [vmem:[%s6514_s1 + $0x158] sm:$0xff] }
  0x38   : > { %4739 = vmatprep.subr.bf16.mxu0 %v4738_v55  ;;  %v3355_v59 = vld [vmem:[%s6514_s1 + $0x380] sm:$0xff]  ;;  %v5912_v43 = vld [vmem:[%s5416_s28 + $0x152] sm:$0xff]  ;;  %v3164_v17 = vld [vmem:[%s6514_s1 + $0x188] sm:$0xff] }
  0x39   : > { %3891 = vmatmul.mubr.f32.vlgmr.msra.gmra.mrb[0].mxu1 %v263_v58  ;;  %v4638_v58 = vpack.c.bf16 %v261_v52, %v260_v51  ;;  %v3321_v51 = vld [vmem:[%s6514_s1 + $0x370] sm:$0xff]  ;;  %v3322_v52 = vld [vmem:[%s6514_s1 + $0x378] sm:$0xff]  ;;  %v3127_v37 = vld [vmem:[%s6514_s1 + $0x160] sm:$0xff] }
  0x3a   : > { %4211 = vmatmul.mubr.f32.vlgmr.msra.gmra.mrb[0].mxu0 %v3180_v61  ;;  %4613 = vmatpush3.bf16.msra.mxu1 %v4610_v54  ;;  %v5610_v54 = vld [vmem:[%s5416_s28 + $0xc1] sm:$0xff]  ;;  %v3358_v12 = vld [vmem:[%s6514_s1 + $0x398] sm:$0xff] }
  0x3b   : > { %4741 = vmatpush3.bf16.msra.mxu0 %v4738_v55  ;;  %3893 = vmatprep.mubr.f32.mxu1 %v5436_v29  ;;  %v3270_v29 = vld [vmem:[%s6514_s1 + $0x2d8] sm:$0xff]  ;;  %v4766_v55 = vpack.c.bf16 %v3274_v48, %v3273_v47  ;;  %v5760_v48 = vld [vmem:[%s5416_s28 + $0xaa] sm:$0xff]  ;;  %v3257_v23 = vld [vmem:[%s5416_s28 + $0x182] sm:$0xff] }
  0x3c   : > { %4213 = vmatprep.mubr.f32.mxu0 %v3181_v63  ;;  %4743 = vmatprep.subr.bf16.mxu0 %v4742_v62  ;;  %v4758_v36 = vpack.c.bf16 %v3270_v29, %v3269_v28  ;;  %v5710_v28 = vld [vmem:[%s5416_s28 + $0x6a] sm:$0xff]  ;;  %v5713_v29 = vld [vmem:[%s5416_s28 + $0x121] sm:$0xff] }
  0x3d   : > { %3894 = vmatmul.mubr.f32.gmra.mrb[2].mxu1 %v3180_v61  ;;  %4615 = vmatprep.subr.bf16.mxu1 %v4614_v0  ;;  %v5626_v61 = vld [vmem:[%s5416_s28 + $0xc9] sm:$0xff]  ;;  %6566 = vst [vmem:[#allocation14_spill] sm:$0xff] %v5713_v29  ;;  %v5757_v47 = vld [vmem:[%s5416_s28 + $0x151] sm:$0xff] }
  0x3e   : > { %4214 = vmatmul.mubr.f32.gmra.mrb[2].mxu0 %v3182_v5  ;;  %3896 = vmatprep.mubr.f32.mxu1 %v3181_v63  ;;  %v4770_v63 = vpack.c.bf16 %v3308_v57, %v3307_v56  ;;  %6570 = vst [vmem:[#allocation18_spill] sm:$0xff] %v5757_v47  ;;  %v5779_v56 = vld [vmem:[%s5416_s28 + $0x169] sm:$0xff] }
  0x3f   : > { %4745 = vmatpush3.bf16.msra.mxu0 %v4742_v62  ;;  %4216 = vmatprep.mubr.f32.mxu0 %v3183_v6  ;;  %v5629_v62 = vld [vmem:[%s5416_s28 + $0x1a] sm:$0xff]  ;;  %6572 = vst [vmem:[#allocation20_spill] sm:$0xff] %v5779_v56  ;;  %v5782_v57 = vld [vmem:[%s5416_s28 + $0xc2] sm:$0xff] }
  0x40   : > { %4747 = vmatprep.subr.bf16.mxu0 %v4746_v8  ;;  %4617 = vmatpush3.bf16.msra.mxu1 %v4614_v0  ;;  %v3309_v0 = vld [vmem:[%s6514_s1 + $0x310] sm:$0xff] }
  0x41   : > { %3897 = vmatmul.mubr.f32.gmra.mrb[4].mxu1 %v3182_v5  ;;  %4619 = vmatprep.subr.bf16.mxu1 %v4618_v11  ;;  %v5649_v5 = vld [vmem:[%s5416_s28 + $0x32] sm:$0xff] }
  0x42   : > { %4217 = vmatmul.mubr.f32.gmra.mrb[4].mxu0 %v3184_v15  ;;  %3899 = vmatprep.mubr.f32.mxu1 %v3183_v6  ;;  %v4774_v6 = vpack.c.bf16 %v3310_v1, %v3309_v0  ;;  %v5798_v0 = vld [vmem:[%s5416_s28 + $0xca] sm:$0xff]  ;;  %v214_v1 = vld [vmem:[%s5416_s28] sm:$0xff] }
  0x43   : > { %4749 = vmatpush3.bf16.msra.mxu0 %v4746_v8  ;;  %4219 = vmatprep.mubr.f32.mxu0 %v3185_v16  ;;  %v3311_v8 = vld [vmem:[%s6514_s1 + $0x320] sm:$0xff] }
  0x44   : > { %4751 = vmatprep.subr.bf16.mxu0 %v4750_v18  ;;  %4621 = vmatpush3.bf16.msra.mxu1 %v4618_v11  ;;  %v5666_v11 = vld [vmem:[%s5416_s28 + $0x3a] sm:$0xff] }
  0x45   : > { %3900 = vmatmul.mubr.f32.gmra.mrb[6].mxu1 %v3184_v15  ;;  %4623 = vmatprep.subr.bf16.mxu1 %v4622_v21  ;;  %v4778_v15 = vpack.c.bf16 %v3312_v9, %v3311_v8  ;;  %v5804_v8 = vpack.c.bf16 %v3356_v60, %v3355_v59  ;;  %v3117_v9 = vld [vmem:[%s6514_s1 + $0x110] sm:$0xff]  ;;  %v5865_v59 = vld [vmem:[%s5416_s28 + $0x48] sm:$0xff] }
  0x46   : > { %4220 = vmatmul.mubr.f32.gmra.mrb[6].mxu0 %v3186_v25  ;;  %3902 = vmatprep.mubr.f32.mxu1 %v3185_v16  ;;  %v3313_v16 = vld [vmem:[%s6514_s1 + $0x330] sm:$0xff]  ;;  %6576 = vst [vmem:[#allocation24_spill] sm:$0xff] %v5865_v59  ;;  %v5868_v60 = vld [vmem:[%s5416_s28 + $0x122] sm:$0xff] }
  0x47   : > { %4753 = vmatpush3.bf16.msra.mxu0 %v4750_v18  ;;  %4222 = vmatprep.mubr.f32.mxu0 %v3187_v26  ;;  %v3314_v18 = vld [vmem:[%s6514_s1 + $0x338] sm:$0xff] }
  0x48   : > { %4755 = vmatprep.subr.bf16.mxu0 %v4754_v27  ;;  %4625 = vmatpush3.bf16.msra.mxu1 %v4622_v21  ;;  %v5691_v21 = vld [vmem:[%s5416_s28 + $0x109] sm:$0xff]  ;;  %v4782_v24 = vpack.c.bf16 %v3314_v18, %v3313_v16 }
  0x49   : > { %3903 = vmatmul.mubr.f32.gmra.mrb[8].mxu1 %v3186_v25  ;;  %4627 = vmatprep.subr.bf16.mxu1 %v4626_v30  ;;  %6564 = vst [vmem:[#allocation12_spill] sm:$0xff] %v5691_v21  ;;  %v3315_v25 = vld [vmem:[%s6514_s1 + $0x340] sm:$0xff]  ;;  %v215_v16 = vld [vmem:[%s5416_s28 + $0x8] sm:$0xff] }
  0x4a   : > { %4223 = vmatmul.mubr.f32.gmra.mrb[8].mxu0 %v3188_v34  ;;  %3905 = vmatprep.mubr.f32.mxu1 %v3187_v26  ;;  %v3316_v26 = vld [vmem:[%s6514_s1 + $0x348] sm:$0xff] }
  0x4b   : > { %4757 = vmatpush3.bf16.msra.mxu0 %v4754_v27  ;;  %4225 = vmatprep.mubr.f32.mxu0 %v5578_v35  ;;  %v5706_v27 = vld [vmem:[%s5416_s28 + $0x111] sm:$0xff]  ;;  %v4786_v32 = vpack.c.bf16 %v3316_v26, %v3315_v25  ;;  %v5817_v18 = vld [vmem:[%s5416_s28 + $0xe2] sm:$0xff] }
  0x4c   : > { %4759 = vmatprep.subr.bf16.mxu0 %v4758_v36  ;;  %4629 = vmatpush3.bf16.msra.mxu1 %v4626_v30  ;;  %6565 = vst [vmem:[#allocation13_spill] sm:$0xff] %v5706_v27  ;;  %v5716_v30 = vld [vmem:[%s5416_s28 + $0x7a] sm:$0xff]  ;;  %v5823_v25 = vld [vmem:[%s5416_s28 + $0xf2] sm:$0xff] }
  0x4d   : > { %3906 = vmatmul.mubr.f32.gmra.mrb[10].mxu1 %v3188_v34  ;;  %4631 = vmatprep.subr.bf16.mxu1 %v4630_v40  ;;  %v3318_v34 = vld [vmem:[%s6514_s1 + $0x358] sm:$0xff] }
  0x4e   : > { %4226 = vmatmul.mubr.f32.gmra.mrb[10].mxu0 %v3190_v44  ;;  %3908 = vmatprep.mubr.f32.mxu1 %v5578_v35  ;;  %v4790_v41 = vpack.c.bf16 %v3318_v34, %v3317_v33  ;;  %v3120_v33 = vld [vmem:[%s6514_s1 + $0x128] sm:$0xff]  ;;  %v5835_v34 = vld [vmem:[%s5416_s28 + $0x20] sm:$0xff] }
  0x4f   : > { %4761 = vmatpush3.bf16.msra.mxu0 %v4758_v36  ;;  %4228 = vmatprep.mubr.f32.mxu0 %v3191_v45  ;;  %v5728_v36 = vld [vmem:[%s5416_s28 + $0x129] sm:$0xff] }
  0x50   : > { %4763 = vmatprep.subr.bf16.mxu0 %v4762_v46  ;;  %4633 = vmatpush3.bf16.msra.mxu1 %v4630_v40  ;;  %6567 = vst [vmem:[#allocation15_spill] sm:$0xff] %v5728_v36  ;;  %v5738_v40 = vld [vmem:[%s5416_s28 + $0x92] sm:$0xff] }
  0x51   : > { %3909 = vmatmul.mubr.f32.gmra.mrb[12].mxu1 %v3190_v44  ;;  %4635 = vmatprep.subr.bf16.mxu1 %v4634_v50  ;;  %v3320_v44 = vld [vmem:[%s6514_s1 + $0x368] sm:$0xff] }
  0x52   : > { %4229 = vmatmul.mubr.f32.gmra.mrb[12].mxu0 %v3192_v53  ;;  %3911 = vmatprep.mubr.f32.mxu1 %v3191_v45  ;;  %v5750_v45 = vld [vmem:[%s5416_s28 + $0x141] sm:$0xff] }
  0x53   : > { %4765 = vmatpush3.bf16.msra.mxu0 %v4762_v46  ;;  %4231 = vmatprep.mubr.f32.mxu0 %v5610_v54  ;;  %6569 = vst [vmem:[#allocation17_spill] sm:$0xff] %v5750_v45  ;;  %v5754_v46 = vld [vmem:[%s5416_s28 + $0x9a] sm:$0xff] }
  0x54   : > { %4767 = vmatprep.subr.bf16.mxu0 %v4766_v55  ;;  %4637 = vmatpush3.bf16.msra.mxu1 %v4634_v50  ;;  %v4794_v50 = vpack.c.bf16 %v3320_v44, %v3319_v42  ;;  %v5843_v42 = vld [vmem:[%s5416_s28 + $0x30] sm:$0xff] }
  0x55   : > { %3912 = vmatmul.mubr.f32.gmra.mrb[14].mxu1 %v3192_v53  ;;  %4639 = vmatprep.subr.bf16.mxu1 %v4638_v58  ;;  %v5772_v53 = vld [vmem:[%s5416_s28 + $0x159] sm:$0xff]  ;;  %6574 = vst [vmem:[#allocation22_spill] sm:$0xff] %v5843_v42  ;;  %v5846_v44 = vld [vmem:[%s5416_s28 + $0x10a] sm:$0xff] }
  0x56   : > { %4232 = vmatmul.mubr.f32.gmra.mrb[14].mxu0 %v5626_v61  ;;  %3914 = vmatprep.mubr.f32.mxu1 %v5610_v54  ;;  %6571 = vst [vmem:[#allocation19_spill] sm:$0xff] %v5772_v53 }
  0x57   : > { %4769 = vmatpush3.bf16.msra.mxu0 %v4766_v55  ;;  %4290 = vmatprep.mubr.f32.mxu0 %v5629_v62  ;;  %v5776_v55 = vld [vmem:[%s5416_s28 + $0xb2] sm:$0xff] }
  0x58   : > { %4771 = vmatprep.subr.bf16.mxu0 %v4770_v63  ;;  %4641 = vmatpush3.bf16.msra.mxu1 %v4638_v58  ;;  %v4798_v58 = vpack.c.bf16 %v3322_v52, %v3321_v51  ;;  %v3122_v51 = vld [vmem:[%s6514_s1 + $0x138] sm:$0xff] }
  0x59   : > { %3915 = vmatmul.mubr.f32.gmra.mrb[16].mxu1 %v5626_v61  ;;  %4643 = vmatprep.subr.bf16.mxu1 %v5637_v2  ;;  %v5858_v52 = vld [vmem:[%s5416_s28 + $0x38] sm:$0xff] }
  0x5a   : > { %4291 = vmatmul.mubr.f32.vlgmr.msra.gmra.mrb[0].mxu0 %v5643_v3  ;;  %3917 = vmatprep.mubr.f32.mxu1 %v5646_v4  ;;  %6575 = vst [vmem:[#allocation23_spill] sm:$0xff] %v5858_v52 }
  0x5b   : > { %4773 = vmatpush3.bf16.msra.mxu0 %v4770_v63  ;;  %4293 = vmatprep.mubr.f32.mxu0 %v5649_v5  ;;  %v5794_v63 = vld [vmem:[%s5416_s28 + $0x171] sm:$0xff] }
  0x5c   : > { %4775 = vmatprep.subr.bf16.mxu0 %v4774_v6  ;;  %6573 = vst [vmem:[#allocation21_spill] sm:$0xff] %v5794_v63 }
  0x5d   : > { %3918 = vmatmul.mubr.f32.gmra.mrb[18].mxu1 %v5662_v10 }
  0x5e   : > { %4294 = vmatmul.mubr.f32.gmra.mrb[2].mxu0 %v5666_v11  ;;  %3920 = vmatprep.mubr.f32.mxu1 %v5669_v13 }
  0x5f   : > { %4296 = vmatprep.mubr.f32.mxu0 %v5672_v14  ;;  %4777 = vmatpush3.bf16.msra.mxu0 %v4774_v6  ;;  %v5802_v6 = vld [vmem:[%s5416_s28 + $0xda] sm:$0xff] }
  0x60   : > { %4779 = vmatprep.subr.bf16.mxu0 %v4778_v15 }
  0x61   : > { %3921 = vmatmul.mubr.f32.gmra.mrb[20].mxu1 %v5684_v19 }
  0x62   : > { %4297 = vmatmul.mubr.f32.gmra.mrb[4].mxu0 %v5688_v20  ;;  %3923 = vmatprep.mubr.f32.mxu1 %v5691_v21  ;;  %v3362_v21 = vld [vmem:[%s6514_s1 + $0x3b8] sm:$0xff] }
  0x63   : > { %4299 = vmatprep.mubr.f32.mxu0 %v5694_v22  ;;  %4781 = vmatpush3.bf16.msra.mxu0 %v4778_v15  ;;  %v3118_v15 = vld [vmem:[%s6514_s1 + $0x118] sm:$0xff] }
  0x64   : > { %4783 = vmatprep.subr.bf16.mxu0 %v4782_v24  ;;  %v4646_v26 = vpack.c.bf16 %v3118_v15, %v3117_v9  ;;  %v3123_v9 = vld [vmem:[%s6514_s1 + $0x140] sm:$0xff]  ;;  %v3124_v15 = vld [vmem:[%s6514_s1 + $0x148] sm:$0xff] }
  0x65   : > { %3924 = vmatmul.mubr.f32.gmra.mrb[22].mxu1 %v5706_v27  ;;  %v3357_v27 = vld [vmem:[%s6514_s1 + $0x390] sm:$0xff] }
  0x66   : > { %4300 = vmatmul.mubr.f32.gmra.mrb[6].mxu0 %v5710_v28  ;;  %3926 = vmatprep.mubr.f32.mxu1 %v5713_v29 }
  0x67   : > { %4302 = vmatprep.mubr.f32.mxu0 %v5716_v30  ;;  %4785 = vmatpush3.bf16.msra.mxu0 %v4782_v24  ;;  %v5820_v24 = vld [vmem:[%s5416_s28 + $0x18] sm:$0xff] }
  0x68   : > { %4787 = vmatprep.subr.bf16.mxu0 %v4786_v32 }
  0x69   : > { %3927 = vmatmul.mubr.f32.gmra.mrb[24].mxu1 %v5728_v36  ;;  %v3163_v36 = vld [vmem:[%s6514_s1 + $0x180] sm:$0xff] }
  0x6a   : > { %4303 = vmatmul.mubr.f32.gmra.mrb[8].mxu0 %v5732_v38  ;;  %3929 = vmatprep.mubr.f32.mxu1 %v5735_v39  ;;  %v5972_v29 = vpack.c.bf16 %v3164_v17, %v3163_v36  ;;  %v5987_v17 = vld [vmem:[%s5416_s28 + $0xd8] sm:$0xff]  ;;  %v3359_v36 = vld [vmem:[%s6514_s1 + $0x3a0] sm:$0xff] }
  0x6b   : > { %4305 = vmatprep.mubr.f32.mxu0 %v5738_v40  ;;  %4789 = vmatpush3.bf16.msra.mxu0 %v4786_v32  ;;  %v3119_v32 = vld [vmem:[%s6514_s1 + $0x120] sm:$0xff] }
  0x6c   : > { %4791 = vmatprep.subr.bf16.mxu0 %v4790_v41 }
  0x6d   : > { %3930 = vmatmul.mubr.f32.gmra.mrb[26].mxu1 %v5750_v45  ;;  %v3130_v45 = vld [vmem:[%s6514_s1 + $0x178] sm:$0xff] }
  0x6e   : > { %4306 = vmatmul.mubr.f32.gmra.mrb[10].mxu0 %v5754_v46  ;;  %3932 = vmatprep.mubr.f32.mxu1 %v5757_v47  ;;  %v3129_v47 = vld [vmem:[%s6514_s1 + $0x170] sm:$0xff] }
  0x6f   : > { %4308 = vmatprep.mubr.f32.mxu0 %v5760_v48  ;;  %4793 = vmatpush3.bf16.msra.mxu0 %v4790_v41  ;;  %v5840_v41 = vld [vmem:[%s5416_s28 + $0xfa] sm:$0xff]  ;;  %v4670_v39 = vpack.c.bf16 %v3130_v45, %v3129_v47  ;;  %v3258_v45 = vld [vmem:[%s5416_s28 + $0x18a] sm:$0xff] }
  0x70   : > { %4795 = vmatprep.subr.bf16.mxu0 %v4794_v50  ;;  %v5970_v47 = vld [vmem:[%s5416_s28 + $0xc0] sm:$0xff] }
  0x71   : > { %3933 = vmatmul.mubr.f32.gmra.mrb[28].mxu1 %v5772_v53  ;;  %v5934_v53 = vld [vmem:[%s5416_s28 + $0x16a] sm:$0xff]  ;;  %6586 = vst [vmem:[#allocation34_spill] sm:$0xff] %v5970_v47 }
  0x72   : > { %4309 = vmatmul.mubr.f32.gmra.mrb[12].mxu0 %v5776_v55  ;;  %3935 = vmatprep.mubr.f32.mxu1 %v5779_v56  ;;  %v3128_v56 = vld [vmem:[%s6514_s1 + $0x168] sm:$0xff] }
  0x73   : > { %4311 = vmatprep.mubr.f32.mxu0 %v5782_v57  ;;  %4797 = vmatpush3.bf16.msra.mxu0 %v4794_v50  ;;  %v4650_v50 = vpack.c.bf16 %v3120_v33, %v3119_v32  ;;  %v5887_v32 = vld [vmem:[%s5416_s28 + $0x60] sm:$0xff]  ;;  %v4666_v31 = vpack.c.bf16 %v3128_v56, %v3127_v37  ;;  %v5950_v37 = vld [vmem:[%s5416_s28 + $0x172] sm:$0xff]  ;;  %v5953_v56 = vld [vmem:[%s5416_s28 + $0xa8] sm:$0xff] }
  0x74   : > { %4799 = vmatprep.subr.bf16.mxu0 %v4798_v58  ;;  %6578 = vst [vmem:[#allocation26_spill] sm:$0xff] %v5887_v32  ;;  %v5890_v33 = vld [vmem:[%s5416_s28 + $0x13a] sm:$0xff]  ;;  %6584 = vst [vmem:[#allocation32_spill] sm:$0xff] %v5953_v56 }
  0x75   : > { %3936 = vmatmul.mubr.f32.gmra.mrb[30].mxu1 %v5794_v63 }
  0x76   : > { %4312 = vmatmul.mubr.f32.gmra.mrb[14].mxu0 %v5798_v0  ;;  %3970 = vmatprep.mubr.f32.mxu1 %v214_v1 }
  0x77   : > { %4314 = vmatprep.mubr.f32.mxu0 %v5802_v6  ;;  %4801 = vmatpush3.bf16.msra.mxu0 %v4798_v58  ;;  %v5862_v58 = vld [vmem:[%s5416_s28 + $0x112] sm:$0xff] }
  0x78   : > { %4803 = vmatprep.subr.bf16.mxu0 %v5804_v8 }
  0x79   : > { %3971 = vmatmul.mubr.f32.vlgmr.msra.gmra.mrb[0].mxu1 %v215_v16  ;;  %v5880_v16 = vld [vmem:[%s5416_s28 + $0x50] sm:$0xff] }
  0x7a   : > { %4315 = vmatmul.mubr.f32.gmra.mrb[16].mxu0 %v5817_v18  ;;  %4645 = vmatpush3.bf16.msra.mxu1 %v5637_v2  ;;  %v3121_v2 = vld [vmem:[%s6514_s1 + $0x130] sm:$0xff]  ;;  %6577 = vst [vmem:[#allocation25_spill] sm:$0xff] %v5880_v16 }
  0x7b   : > { %3973 = vmatprep.mubr.f32.mxu1 %v5820_v24  ;;  %4317 = vmatprep.mubr.f32.mxu0 %v5823_v25  ;;  %v4654_v1 = vpack.c.bf16 %v3122_v51, %v3121_v2  ;;  %v4658_v2 = vpack.c.bf16 %v3124_v15, %v3123_v9  ;;  %v3125_v51 = vld [vmem:[%s6514_s1 + $0x150] sm:$0xff]  ;;  %v5906_v9 = vld [vmem:[%s5416_s28 + $0x142] sm:$0xff]  ;;  %v5909_v15 = vld [vmem:[%s5416_s28 + $0x78] sm:$0xff] }
  0x7c   : > { %4647 = vmatprep.subr.bf16.mxu1 %v4646_v26  ;;  %6580 = vst [vmem:[#allocation28_spill] sm:$0xff] %v5909_v15  ;;  %v4662_v63 = vpack.c.bf16 %v3126_v49, %v3125_v51  ;;  %v5928_v49 = vld [vmem:[%s5416_s28 + $0x15a] sm:$0xff]  ;;  %v5931_v51 = vld [vmem:[%s5416_s28 + $0x90] sm:$0xff] }
  0x7d   : > { %3974 = vmatmul.mubr.f32.gmra.mrb[2].mxu1 %v5835_v34  ;;  %6582 = vst [vmem:[#allocation30_spill] sm:$0xff] %v5931_v51 }
  0x7e   : > { %4318 = vmatmul.mubr.f32.gmra.mrb[18].mxu0 %v5840_v41  ;;  %3976 = vmatprep.mubr.f32.mxu1 %v5843_v42 }
  0x7f   : > { %4320 = vmatprep.mubr.f32.mxu0 %v5846_v44  ;;  %4649 = vmatpush3.bf16.msra.mxu1 %v4646_v26  ;;  %v5884_v26 = vld [vmem:[%s5416_s28 + $0x12a] sm:$0xff] }
  0x80   : > { %4651 = vmatprep.subr.bf16.mxu1 %v4650_v50 }
  0x81   : > { %3977 = vmatmul.mubr.f32.gmra.mrb[4].mxu1 %v5858_v52 }
  0x82   : > { %4321 = vmatmul.mubr.f32.gmra.mrb[20].mxu0 %v5862_v58  ;;  %3979 = vmatprep.mubr.f32.mxu1 %v5865_v59 }
  0x83   : > { %4323 = vmatprep.mubr.f32.mxu0 %v5868_v60  ;;  %4653 = vmatpush3.bf16.msra.mxu1 %v4650_v50  ;;  %v5902_v50 = vld [vmem:[%s5416_s28 + $0x68] sm:$0xff] }
  0x84   : > { %4655 = vmatprep.subr.bf16.mxu1 %v4654_v1  ;;  %6579 = vst [vmem:[#allocation27_spill] sm:$0xff] %v5902_v50 }
  0x85   : > { %3980 = vmatmul.mubr.f32.gmra.mrb[6].mxu1 %v5880_v16 }
  0x86   : > { %4324 = vmatmul.mubr.f32.gmra.mrb[22].mxu0 %v5884_v26  ;;  %3982 = vmatprep.mubr.f32.mxu1 %v5887_v32 }
  0x87   : > { %4326 = vmatprep.mubr.f32.mxu0 %v5890_v33  ;;  %4657 = vmatpush3.bf16.msra.mxu1 %v4654_v1  ;;  %v5924_v1 = vld [vmem:[%s5416_s28 + $0x80] sm:$0xff] }
  0x88   : > { %4659 = vmatprep.subr.bf16.mxu1 %v4658_v2  ;;  %6581 = vst [vmem:[#allocation29_spill] sm:$0xff] %v5924_v1 }
  0x89   : > { %3983 = vmatmul.mubr.f32.gmra.mrb[8].mxu1 %v5902_v50 }
  0x8a   : > { %4327 = vmatmul.mubr.f32.gmra.mrb[24].mxu0 %v5906_v9  ;;  %3985 = vmatprep.mubr.f32.mxu1 %v5909_v15 }
  0x8b   : > { %4329 = vmatprep.mubr.f32.mxu0 %v5912_v43  ;;  %4661 = vmatpush3.bf16.msra.mxu1 %v4658_v2  ;;  %v5946_v2 = vld [vmem:[%s5416_s28 + $0x98] sm:$0xff] }
  0x8c   : > { %4663 = vmatprep.subr.bf16.mxu1 %v4662_v63  ;;  %6583 = vst [vmem:[#allocation31_spill] sm:$0xff] %v5946_v2 }
  0x8d   : > { %3986 = vmatmul.mubr.f32.gmra.mrb[10].mxu1 %v5924_v1 }
  0x8e   : > { %4330 = vmatmul.mubr.f32.gmra.mrb[26].mxu0 %v5928_v49  ;;  %3988 = vmatprep.mubr.f32.mxu1 %v5931_v51 }
  0x8f   : > { %4332 = vmatprep.mubr.f32.mxu0 %v5934_v53  ;;  %4665 = vmatpush3.bf16.msra.mxu1 %v4662_v63  ;;  %v5966_v63 = vld [vmem:[%s5416_s28 + $0xb0] sm:$0xff] }
  0x90   : > { %4667 = vmatprep.subr.bf16.mxu1 %v4666_v31  ;;  %6585 = vst [vmem:[#allocation33_spill] sm:$0xff] %v5966_v63 }
  0x91   : > { %3989 = vmatmul.mubr.f32.gmra.mrb[12].mxu1 %v5946_v2 }
  0x92   : > { %4333 = vmatmul.mubr.f32.gmra.mrb[28].mxu0 %v5950_v37  ;;  %3991 = vmatprep.mubr.f32.mxu1 %v5953_v56 }
  0x93   : > { %4335 = vmatprep.mubr.f32.mxu0 %v3257_v23  ;;  %4669 = vmatpush3.bf16.msra.mxu1 %v4666_v31  ;;  %v5983_v23 = vld [vmem:[%s5416_s28 + $0xc8] sm:$0xff]  ;;  %v4806_v31 = vpack.c.bf16 %v3358_v12, %v3357_v27  ;;  %v6005_v12 = vld [vmem:[%s5416_s28 + $0xf0] sm:$0xff] }
  0x94   : > { %4671 = vmatprep.subr.bf16.mxu1 %v4670_v39  ;;  %6587 = vst [vmem:[#allocation35_spill] sm:$0xff] %v5983_v23 }
  0x95   : > { %3992 = vmatmul.mubr.f32.gmra.mrb[14].mxu1 %v5966_v63 }
  0x96   : > { %4336 = vmatmul.mubr.f32.gmra.mrb[30].mxu0 %v3258_v45  ;;  %3994 = vmatprep.mubr.f32.mxu1 %v5970_v47  ;;  %v3360_v45 = vld [vmem:[%s6514_s1 + $0x3a8] sm:$0xff] }
  0x97   : > { %4370 = vmatprep.mubr.f32.mxu0 %v5843_v42  ;;  %4673 = vmatpush3.bf16.msra.mxu1 %v4670_v39  ;;  %v6000_v39 = vld [vmem:[%s5416_s28 + $0xe0] sm:$0xff]  ;;  %v4810_v27 = vpack.c.bf16 %v3360_v45, %v3359_v36  ;;  %v6021_v36 = vld [vmem:[%s5416_s28 + $0x108] sm:$0xff] }
  0x98   : > { %4675 = vmatprep.subr.bf16.mxu1 %v5972_v29  ;;  %v762_v42 = vld [vmem:[%s5416_s28 + $0xa] sm:$0xff] }
  0x99   : > { %3995 = vmatmul.mubr.f32.gmra.mrb[16].mxu1 %v5983_v23 }
  0x9a   : > { %4371 = vmatmul.mubr.f32.vlgmr.msra.gmra.mrb[0].mxu0 %v5858_v52  ;;  %3997 = vmatprep.mubr.f32.mxu1 %v5987_v17  ;;  %v3361_v52 = vld [vmem:[%s6514_s1 + $0x3b0] sm:$0xff] }
  0x9b   : > { %4805 = vmatpush3.bf16.msra.mxu0 %v5804_v8  ;;  %4373 = vmatprep.mubr.f32.mxu0 %v5865_v59  ;;  %v6017_v8 = vld [vmem:[%s5416_s28 + $0xf8] sm:$0xff]  ;;  %v4814_v45 = vpack.c.bf16 %v3362_v21, %v3361_v52  ;;  %v3363_v59 = vld [vmem:[%s6514_s1 + $0x3c0] sm:$0xff] }
  0x9c   : > { %4807 = vmatprep.subr.bf16.mxu0 %v4806_v31  ;;  %v6037_v21 = vld [vmem:[%s5416_s28 + $0x120] sm:$0xff] }
  0x9d   : > { %3998 = vmatmul.mubr.f32.gmra.mrb[18].mxu1 %v6000_v39 }
  0x9e   : > { %4374 = vmatmul.mubr.f32.gmra.mrb[2].mxu0 %v5880_v16  ;;  %4000 = vmatprep.mubr.f32.mxu1 %v6005_v12  ;;  %v3364_v16 = vld [vmem:[%s6514_s1 + $0x3c8] sm:$0xff] }
  0x9f   : > { %4376 = vmatprep.mubr.f32.mxu0 %v5887_v32  ;;  %4809 = vmatpush3.bf16.msra.mxu0 %v4806_v31  ;;  %v6033_v31 = vld [vmem:[%s5416_s28 + $0x110] sm:$0xff]  ;;  %v4818_v52 = vpack.c.bf16 %v3364_v16, %v3363_v59  ;;  %v6053_v59 = vld [vmem:[%s5416_s28 + $0x138] sm:$0xff] }
  0xa0   : > { %4811 = vmatprep.subr.bf16.mxu0 %v4810_v27  ;;  %v3365_v32 = vld [vmem:[%s6514_s1 + $0x3d0] sm:$0xff] }
  0xa1   : > { %4001 = vmatmul.mubr.f32.gmra.mrb[20].mxu1 %v6017_v8 }
  0xa2   : > { %4377 = vmatmul.mubr.f32.gmra.mrb[4].mxu0 %v5902_v50  ;;  %4003 = vmatprep.mubr.f32.mxu1 %v6021_v36  ;;  %v3366_v50 = vld [vmem:[%s6514_s1 + $0x3d8] sm:$0xff] }
  0xa3   : > { %4379 = vmatprep.mubr.f32.mxu0 %v5909_v15  ;;  %4813 = vmatpush3.bf16.msra.mxu0 %v4810_v27  ;;  %v6049_v15 = vld [vmem:[%s5416_s28 + $0x128] sm:$0xff]  ;;  %v4822_v16 = vpack.c.bf16 %v3366_v50, %v3365_v32  ;;  %v3367_v27 = vld [vmem:[%s6514_s1 + $0x3e0] sm:$0xff]  ;;  %v6069_v32 = vld [vmem:[%s5416_s28 + $0x150] sm:$0xff] }
  0xa4   : > { %4815 = vmatprep.subr.bf16.mxu0 %v4814_v45 }
  0xa5   : > { %4004 = vmatmul.mubr.f32.gmra.mrb[22].mxu1 %v6033_v31 }
  0xa6   : > { %4380 = vmatmul.mubr.f32.gmra.mrb[6].mxu0 %v5924_v1  ;;  %4006 = vmatprep.mubr.f32.mxu1 %v6037_v21  ;;  %v3368_v1 = vld [vmem:[%s6514_s1 + $0x3e8] sm:$0xff] }
  0xa7   : > { %4382 = vmatprep.mubr.f32.mxu0 %v5931_v51  ;;  %4817 = vmatpush3.bf16.msra.mxu0 %v4814_v45  ;;  %v6065_v51 = vld [vmem:[%s5416_s28 + $0x140] sm:$0xff]  ;;  %v4826_v50 = vpack.c.bf16 %v3368_v1, %v3367_v27  ;;  %v3369_v45 = vld [vmem:[%s6514_s1 + $0x3f0] sm:$0xff]  ;;  %v6085_v1 = vld [vmem:[%s5416_s28 + $0x168] sm:$0xff] }
  0xa8   : > { %4819 = vmatprep.subr.bf16.mxu0 %v4818_v52  ;;  %v3403_v27 = vld [vmem:[%s6514_s1 + $0x400] sm:$0xff] }
  0xa9   : > { %4007 = vmatmul.mubr.f32.gmra.mrb[24].mxu1 %v6049_v15 }
  0xaa   : > { %4383 = vmatmul.mubr.f32.gmra.mrb[8].mxu0 %v5946_v2  ;;  %4009 = vmatprep.mubr.f32.mxu1 %v6053_v59  ;;  %v3370_v2 = vld [vmem:[%s6514_s1 + $0x3f8] sm:$0xff] }
  0xab   : > { %4385 = vmatprep.mubr.f32.mxu0 %v5953_v56  ;;  %4821 = vmatpush3.bf16.msra.mxu0 %v4818_v52  ;;  %v6081_v56 = vld [vmem:[%s5416_s28 + $0x158] sm:$0xff]  ;;  %v4830_v52 = vpack.c.bf16 %v3370_v2, %v3369_v45  ;;  %v761_v2 = vld [vmem:[%s5416_s28 + $0x2] sm:$0xff]  ;;  %v3165_v45 = vld [vmem:[%s6514_s1 + $0x190] sm:$0xff] }
  0xac   : > { %4823 = vmatprep.subr.bf16.mxu0 %v4822_v16 }
  0xad   : > { %4010 = vmatmul.mubr.f32.gmra.mrb[26].mxu1 %v6065_v51 }
  0xae   : > { %4386 = vmatmul.mubr.f32.gmra.mrb[10].mxu0 %v5966_v63  ;;  %4012 = vmatprep.mubr.f32.mxu1 %v6069_v32  ;;  %v3404_v63 = vld [vmem:[%s6514_s1 + $0x408] sm:$0xff] }
  0xaf   : > { %4388 = vmatprep.mubr.f32.mxu0 %v5970_v47  ;;  %4825 = vmatpush3.bf16.msra.mxu0 %v4822_v16  ;;  %v6097_v47 = vld [vmem:[%s5416_s28 + $0x170] sm:$0xff]  ;;  %v6101_v16 = vpack.c.bf16 %v3404_v63, %v3403_v27  ;;  %v3167_v63 = vld [vmem:[%s6514_s1 + $0x1a0] sm:$0xff]  ;;  %v3168_v27 = vld [vmem:[%s6514_s1 + $0x1a8] sm:$0xff] }
  0xb0   : > { %4827 = vmatprep.subr.bf16.mxu0 %v4826_v50 }
  0xb1   : > { %4013 = vmatmul.mubr.f32.gmra.mrb[28].mxu1 %v6081_v56 }
  0xb2   : > { %4389 = vmatmul.mubr.f32.gmra.mrb[12].mxu0 %v5983_v23  ;;  %4015 = vmatprep.mubr.f32.mxu1 %v6085_v1  ;;  %v3166_v23 = vld [vmem:[%s6514_s1 + $0x198] sm:$0xff] }
  0xb3   : > { %4391 = vmatprep.mubr.f32.mxu0 %v5987_v17  ;;  %4829 = vmatpush3.bf16.msra.mxu0 %v4826_v50  ;;  %v4678_v50 = vpack.c.bf16 %v3166_v23, %v3165_v45  ;;  %v4682_v23 = vpack.c.bf16 %v3168_v27, %v3167_v63  ;;  %v3176_v45 = vld [vmem:[%s6514_s1 + $0x1e8] sm:$0xff]  ;;  %v3178_v63 = vld [vmem:[%s6514_s1 + $0x1f8] sm:$0xff] }
  0xb4   : > { %4831 = vmatprep.subr.bf16.mxu0 %v4830_v52  ;;  %v3305_v27 = vld [vmem:[%s5416_s28 + $0x198] sm:$0xff] }
  0xb5   : > { %4016 = vmatmul.mubr.f32.gmra.mrb[30].mxu1 %v6097_v47 }
  0xb6   : > { %4392 = vmatmul.mubr.f32.gmra.mrb[14].mxu0 %v6000_v39  ;;  %4050 = vmatprep.mubr.f32.mxu1 %v761_v2  ;;  %v3174_v2 = vld [vmem:[%s6514_s1 + $0x1d8] sm:$0xff] }
  0xb7   : > { %4394 = vmatprep.mubr.f32.mxu0 %v6005_v12  ;;  %4833 = vmatpush3.bf16.msra.mxu0 %v4830_v52  ;;  %v3170_v52 = vld [vmem:[%s6514_s1 + $0x1b8] sm:$0xff] }
  0xb8   : > { %4835 = vmatprep.subr.bf16.mxu0 %v6101_v16 }
  0xb9   : > { %4051 = vmatmul.mubr.f32.vlgmr.msra.gmra.mrb[0].mxu1 %v762_v42  ;;  %v3169_v42 = vld [vmem:[%s6514_s1 + $0x1b0] sm:$0xff] }
  0xba   : > { %4395 = vmatmul.mubr.f32.gmra.mrb[16].mxu0 %v6017_v8  ;;  %4677 = vmatpush3.bf16.msra.mxu1 %v5972_v29  ;;  %v3172_v29 = vld [vmem:[%s6514_s1 + $0x1c8] sm:$0xff] }
  0xbb   : > { %4053 = vmatprep.mubr.f32.mxu1 %v5629_v62  ;;  %4397 = vmatprep.mubr.f32.mxu0 %v6021_v36  ;;  %v4686_v62 = vpack.c.bf16 %v3170_v52, %v3169_v42  ;;  %v3405_v42 = vld [vmem:[%s6514_s1 + $0x410] sm:$0xff] }
  0xbc   : > { %4679 = vmatprep.subr.bf16.mxu1 %v4678_v50  ;;  %v3325_v52 = vld [vmem:[%s5416_s28 + $0x49] sm:$0xff] }
  0xbd   : > { %4054 = vmatmul.mubr.f32.gmra.mrb[2].mxu1 %v5643_v3  ;;  %v3171_v3 = vld [vmem:[%s6514_s1 + $0x1c0] sm:$0xff] }
  0xbe   : > { %4398 = vmatmul.mubr.f32.gmra.mrb[18].mxu0 %v6033_v31  ;;  %4056 = vmatprep.mubr.f32.mxu1 %v5649_v5  ;;  %v4690_v5 = vpack.c.bf16 %v3172_v29, %v3171_v3  ;;  %v3408_v3 = vld [vmem:[%s6514_s1 + $0x428] sm:$0xff] }
  0xbf   : > { %4400 = vmatprep.mubr.f32.mxu0 %v6037_v21  ;;  %4681 = vmatpush3.bf16.msra.mxu1 %v4678_v50  ;;  %v3177_v50 = vld [vmem:[%s6514_s1 + $0x1f0] sm:$0xff]  ;;  %v3327_v29 = vld [vmem:[%s5416_s28 + $0x61] sm:$0xff] }
  0xc0   : > { %4683 = vmatprep.subr.bf16.mxu1 %v4682_v23 }
  0xc1   : > { %4057 = vmatmul.mubr.f32.gmra.mrb[4].mxu1 %v5666_v11  ;;  %v3173_v11 = vld [vmem:[%s6514_s1 + $0x1d0] sm:$0xff] }
  0xc2   : > { %4401 = vmatmul.mubr.f32.gmra.mrb[20].mxu0 %v6049_v15  ;;  %4059 = vmatprep.mubr.f32.mxu1 %v5672_v14  ;;  %v4694_v14 = vpack.c.bf16 %v3174_v2, %v3173_v11  ;;  %v3410_v11 = vld [vmem:[%s6514_s1 + $0x438] sm:$0xff] }
  0xc3   : > { %4403 = vmatprep.mubr.f32.mxu0 %v6053_v59  ;;  %4685 = vmatpush3.bf16.msra.mxu1 %v4682_v23  ;;  %v3306_v23 = vld [vmem:[%s5416_s28 + $0x1a0] sm:$0xff] }
  0xc4   : > { %4687 = vmatprep.subr.bf16.mxu1 %v4686_v62 }
  0xc5   : > { %4060 = vmatmul.mubr.f32.gmra.mrb[6].mxu1 %v5688_v20  ;;  %v3175_v20 = vld [vmem:[%s6514_s1 + $0x1e0] sm:$0xff] }
  0xc6   : > { %4404 = vmatmul.mubr.f32.gmra.mrb[22].mxu0 %v6065_v51  ;;  %4062 = vmatprep.mubr.f32.mxu1 %v5694_v22  ;;  %v6165_v22 = vld [vmem:[%s5416_s28 + $0x180] sm:$0xff] }
  0xc7   : > { %4406 = vmatprep.mubr.f32.mxu0 %v6069_v32  ;;  %4689 = vmatpush3.bf16.msra.mxu1 %v4686_v62 }
  0xc8   : > { %4691 = vmatprep.subr.bf16.mxu1 %v4690_v5 }
  0xc9   : > { %4063 = vmatmul.mubr.f32.gmra.mrb[8].mxu1 %v5710_v28  ;;  %v4698_v28 = vpack.c.bf16 %v3176_v45, %v3175_v20  ;;  %v3414_v45 = vld [vmem:[%s6514_s1 + $0x458] sm:$0xff] }
  0xca   : > { %4407 = vmatmul.mubr.f32.gmra.mrb[24].mxu0 %v6081_v56  ;;  %4065 = vmatprep.mubr.f32.mxu1 %v5716_v30  ;;  %v6178_v30 = vld [vmem:[%s5416_s28 + $0x188] sm:$0xff] }
  0xcb   : > { %4409 = vmatprep.mubr.f32.mxu0 %v6085_v1  ;;  %4693 = vmatpush3.bf16.msra.mxu1 %v4690_v5  ;;  %v3409_v5 = vld [vmem:[%s6514_s1 + $0x430] sm:$0xff] }
  0xcc   : > { %4695 = vmatprep.subr.bf16.mxu1 %v4694_v14  ;;  %v4846_v2 = vpack.c.bf16 %v3410_v11, %v3409_v5  ;;  %v6302_v5 = vld [vmem:[%s5416_s28 + $0x189] sm:$0xff]  ;;  %v3353_v11 = vld [vmem:[%s5416_s28 + $0x199] sm:$0xff] }
  0xcd   : > { %4066 = vmatmul.mubr.f32.gmra.mrb[10].mxu1 %v5732_v38  ;;  %v4702_v38 = vpack.c.bf16 %v3178_v63, %v3177_v50  ;;  %v3416_v63 = vld [vmem:[%s6514_s1 + $0x468] sm:$0xff] }
  0xce   : > { %4410 = vmatmul.mubr.f32.gmra.mrb[26].mxu0 %v6097_v47  ;;  %4068 = vmatprep.mubr.f32.mxu1 %v5738_v40  ;;  %v3323_v40 = vld [vmem:[%s5416_s28 + $0x31] sm:$0xff] }
  0xcf   : > { %4412 = vmatprep.mubr.f32.mxu0 %v6165_v22  ;;  %4697 = vmatpush3.bf16.msra.mxu1 %v4694_v14  ;;  %v3412_v14 = vld [vmem:[%s6514_s1 + $0x448] sm:$0xff] }
  0xd0   : > { %4699 = vmatprep.subr.bf16.mxu1 %v4698_v28 }
  0xd1   : > { %4069 = vmatmul.mubr.f32.gmra.mrb[12].mxu1 %v5754_v46  ;;  %v3406_v46 = vld [vmem:[%s6514_s1 + $0x418] sm:$0xff] }
  0xd2   : > { %4413 = vmatmul.mubr.f32.gmra.mrb[28].mxu0 %v6178_v30  ;;  %4071 = vmatprep.mubr.f32.mxu1 %v5760_v48  ;;  %v3324_v48 = vld [vmem:[%s5416_s28 + $0x39] sm:$0xff]  ;;  %v4838_v62 = vpack.c.bf16 %v3406_v46, %v3405_v42 }
  0xd3   : > { %4415 = vmatprep.mubr.f32.mxu0 %v3305_v27  ;;  %4701 = vmatpush3.bf16.msra.mxu1 %v4698_v28  ;;  %v3333_v28 = vld [vmem:[%s5416_s28 + $0xa9] sm:$0xff]  ;;  %v3418_v27 = vld [vmem:[%s6514_s1 + $0x478] sm:$0xff]  ;;  %v6606_v46 = vld [vmem:[#allocation29_spill] sm:$0xff] }
  0xd4   : > { %4703 = vmatprep.subr.bf16.mxu1 %v4702_v38  ;;  %v6605_v42 = vld [vmem:[#allocation8_spill] sm:$0xff] }
  0xd5   : > { %4072 = vmatmul.mubr.f32.gmra.mrb[14].mxu1 %v5776_v55  ;;  %v3407_v55 = vld [vmem:[%s6514_s1 + $0x420] sm:$0xff] }
  0xd6   : > { %4416 = vmatmul.mubr.f32.gmra.mrb[30].mxu0 %v3306_v23  ;;  %4074 = vmatprep.mubr.f32.mxu1 %v5782_v57  ;;  %v3326_v57 = vld [vmem:[%s5416_s28 + $0x51] sm:$0xff] }
  0xd7   : > { %4450 = vmatprep.mubr.f32.mxu0 %v3323_v40  ;;  %4705 = vmatpush3.bf16.msra.mxu1 %v4702_v38  ;;  %v6602_v38 = vld [vmem:[#allocation17_spill] sm:$0xff]  ;;  %v6603_v23 = vld [vmem:[#allocation28_spill] sm:$0xff]  ;;  %v6604_v40 = vld [vmem:[#allocation18_spill] sm:$0xff] }
  0xd8   : > { %4866 = vmatprep.subr.bf16.mxu1 %v5373_v7 }
  0xd9   : > { %4075 = vmatmul.mubr.f32.gmra.mrb[16].mxu1 %v5798_v0  ;;  %v4842_v0 = vpack.c.bf16 %v3408_v3, %v3407_v55  ;;  %v6294_v55 = vld [vmem:[%s5416_s28 + $0x181] sm:$0xff] }
  0xda   : > { %4451 = vmatmul.mubr.f32.vlgmr.msra.gmra.mrb[0].mxu0 %v3324_v48  ;;  %4077 = vmatprep.mubr.f32.mxu1 %v5802_v6  ;;  %v3328_v6 = vld [vmem:[%s5416_s28 + $0x69] sm:$0xff]  ;;  %v6610_v3 = vld [vmem:[#allocation9_spill] sm:$0xff] }
  0xdb   : > { %4837 = vmatpush3.bf16.msra.mxu0 %v6101_v16  ;;  %4453 = vmatprep.mubr.f32.mxu0 %v3325_v52  ;;  %v3329_v16 = vld [vmem:[%s5416_s28 + $0x79] sm:$0xff]  ;;  %v6607_v48 = vld [vmem:[#allocation19_spill] sm:$0xff]  ;;  %v6608_v52 = vld [vmem:[#allocation30_spill] sm:$0xff] }
  0xdc   : > { %4839 = vmatprep.subr.bf16.mxu0 %v4838_v62 }
  0xdd   : > { %4078 = vmatmul.mubr.f32.gmra.mrb[18].mxu1 %v5817_v18  ;;  %v3411_v18 = vld [vmem:[%s6514_s1 + $0x440] sm:$0xff] }
  0xde   : > { %4454 = vmatmul.mubr.f32.gmra.mrb[2].mxu0 %v3326_v57  ;;  %4080 = vmatprep.mubr.f32.mxu1 %v5823_v25  ;;  %v3330_v25 = vld [vmem:[%s5416_s28 + $0x81] sm:$0xff]  ;;  %v4850_v20 = vpack.c.bf16 %v3412_v14, %v3411_v18  ;;  %v6611_v57 = vld [vmem:[#allocation31_spill] sm:$0xff] }
  0xdf   : > { %4456 = vmatprep.mubr.f32.mxu0 %v3327_v29  ;;  %4841 = vmatpush3.bf16.msra.mxu0 %v4838_v62  ;;  %v6609_v62 = vld [vmem:[#allocation20_spill] sm:$0xff]  ;;  %v6612_v29 = vld [vmem:[#allocation21_spill] sm:$0xff] }
  0xe0   : > { %4843 = vmatprep.subr.bf16.mxu0 %v4842_v0  ;;  %v3354_v18 = vld [vmem:[%s5416_s28 + $0x1a1] sm:$0xff]  ;;  %v3371_v14 = vld [vmem:[%s5416_s28 + $0x32] sm:$0xff] }
  0xe1   : > { %4081 = vmatmul.mubr.f32.gmra.mrb[20].mxu1 %v5840_v41  ;;  %v3413_v41 = vld [vmem:[%s6514_s1 + $0x450] sm:$0xff] }
  0xe2   : > { %4457 = vmatmul.mubr.f32.gmra.mrb[4].mxu0 %v3328_v6  ;;  %4083 = vmatprep.mubr.f32.mxu1 %v5846_v44  ;;  %v3332_v44 = vld [vmem:[%s5416_s28 + $0x99] sm:$0xff]  ;;  %v4854_v50 = vpack.c.bf16 %v3414_v45, %v3413_v41  ;;  %v6614_v6 = vld [vmem:[#allocation10_spill] sm:$0xff] }
  0xe3   : > { %4459 = vmatprep.mubr.f32.mxu0 %v3329_v16  ;;  %4845 = vmatpush3.bf16.msra.mxu0 %v4842_v0  ;;  %v6613_v0 = vld [vmem:[#allocation32_spill] sm:$0xff]  ;;  %v6615_v16 = vld [vmem:[#allocation33_spill] sm:$0xff]  ;;  %v3373_v45 = vld [vmem:[%s5416_s28 + $0x4a] sm:$0xff] }
  0xe4   : > { %4847 = vmatprep.subr.bf16.mxu0 %v4846_v2  ;;  %v3372_v41 = vld [vmem:[%s5416_s28 + $0x3a] sm:$0xff] }
  0xe5   : > { %4084 = vmatmul.mubr.f32.gmra.mrb[22].mxu1 %v5862_v58  ;;  %v3415_v58 = vld [vmem:[%s6514_s1 + $0x460] sm:$0xff] }
  0xe6   : > { %4460 = vmatmul.mubr.f32.gmra.mrb[6].mxu0 %v3330_v25  ;;  %4086 = vmatprep.mubr.f32.mxu1 %v5868_v60  ;;  %v4858_v60 = vpack.c.bf16 %v3416_v63, %v3415_v58  ;;  %v6617_v25 = vld [vmem:[#allocation11_spill] sm:$0xff]  ;;  %v3388_v58 = vld [vmem:[%s5416_s28 + $0xfa] sm:$0xff] }
  0xe7   : > { %4462 = vmatprep.mubr.f32.mxu0 %v5578_v35  ;;  %4849 = vmatpush3.bf16.msra.mxu0 %v4846_v2  ;;  %v3334_v35 = vld [vmem:[%s5416_s28 + $0xb1] sm:$0xff]  ;;  %v6616_v2 = vld [vmem:[#allocation34_spill] sm:$0xff]  ;;  %v3198_v63 = vld [vmem:[%s5416_s28 + $0xf9] sm:$0xff] }
  0xe8   : > { %4851 = vmatprep.subr.bf16.mxu0 %v4850_v20 }
  0xe9   : > { %4087 = vmatmul.mubr.f32.gmra.mrb[24].mxu1 %v5884_v26  ;;  %v3417_v26 = vld [vmem:[%s6514_s1 + $0x470] sm:$0xff] }
  0xea   : > { %4463 = vmatmul.mubr.f32.gmra.mrb[8].mxu0 %v3332_v44  ;;  %4089 = vmatprep.mubr.f32.mxu1 %v5890_v33  ;;  %v4862_v33 = vpack.c.bf16 %v3418_v27, %v3417_v26  ;;  %v3374_v44 = vld [vmem:[%s5416_s28 + $0x52] sm:$0xff]  ;;  %v3392_v27 = vld [vmem:[%s5416_s28 + $0x12a] sm:$0xff] }
  0xeb   : > { %4465 = vmatprep.mubr.f32.mxu0 %v3333_v28  ;;  %4853 = vmatpush3.bf16.msra.mxu0 %v4850_v20  ;;  %v6618_v20 = vld [vmem:[#allocation35_spill] sm:$0xff]  ;;  %v3375_v28 = vld [vmem:[%s5416_s28 + $0x62] sm:$0xff] }
  0xec   : > { %4855 = vmatprep.subr.bf16.mxu0 %v4854_v50  ;;  %v3200_v26 = vld [vmem:[%s5416_s28 + $0x111] sm:$0xff] }
  0xed   : > { %4090 = vmatmul.mubr.f32.gmra.mrb[26].mxu1 %v5906_v9  ;;  %v6599_v9 = vld [vmem:[#allocation16_spill] sm:$0xff] }
  0xee   : > { %4466 = vmatmul.mubr.f32.gmra.mrb[10].mxu0 %v3334_v35  ;;  %4092 = vmatprep.mubr.f32.mxu1 %v5912_v43  ;;  %v6588_v43 = vld [vmem:[#allocation22_spill] sm:$0xff]  ;;  %v3390_v35 = vld [vmem:[%s5416_s28 + $0x112] sm:$0xff] }
  0xef   : > { %4468 = vmatprep.mubr.f32.mxu0 %v5610_v54  ;;  %4857 = vmatpush3.bf16.msra.mxu0 %v4854_v50  ;;  %v6589_v54 = vld [vmem:[#allocation12_spill] sm:$0xff] }
  0xf0   : > { %4859 = vmatprep.subr.bf16.mxu0 %v4858_v60  ;;  %v3377_v50 = vld [vmem:[%s5416_s28 + $0x7a] sm:$0xff] }
  0xf1   : > { %4093 = vmatmul.mubr.f32.gmra.mrb[28].mxu1 %v5928_v49  ;;  %v6600_v49 = vld [vmem:[#allocation7_spill] sm:$0xff] }
  0xf2   : > { %4469 = vmatmul.mubr.f32.gmra.mrb[12].mxu0 %v5626_v61  ;;  %4095 = vmatprep.mubr.f32.mxu1 %v5934_v53  ;;  %v6590_v61 = vld [vmem:[#allocation5_spill] sm:$0xff]  ;;  %v6593_v53 = vld [vmem:[#allocation24_spill] sm:$0xff] }
  0xf3   : > { %4471 = vmatprep.mubr.f32.mxu0 %v5646_v4  ;;  %4861 = vmatpush3.bf16.msra.mxu0 %v4858_v60  ;;  %v6591_v4 = vld [vmem:[#allocation23_spill] sm:$0xff]  ;;  %v3391_v60 = vld [vmem:[%s5416_s28 + $0x122] sm:$0xff] }
  0xf4   : > { %4863 = vmatprep.subr.bf16.mxu0 %v4862_v33 }
  0xf5   : > { %4096 = vmatmul.mubr.f32.gmra.mrb[30].mxu1 %v5950_v37  ;;  %v6601_v37 = vld [vmem:[#allocation27_spill] sm:$0xff] }
  0xf6   : > { %4472 = vmatmul.mubr.f32.gmra.mrb[14].mxu0 %v5662_v10  ;;  %4130 = vmatprep.mubr.f32.mxu1 %v5820_v24  ;;  %v6592_v10 = vld [vmem:[#allocation13_spill] sm:$0xff]  ;;  %v6595_v24 = vld [vmem:[#allocation6_spill] sm:$0xff] }
  0xf7   : > { %4474 = vmatprep.mubr.f32.mxu0 %v5669_v13  ;;  %4865 = vmatpush3.bf16.msra.mxu0 %v4862_v33  ;;  %v6594_v13 = vld [vmem:[#allocation14_spill] sm:$0xff] }
  0xf8   : > { %v3201_v33 = vld [vmem:[%s5416_s28 + $0x121] sm:$0xff] }
  0xf9   : > { %4131 = vmatmul.mubr.f32.vlgmr.msra.gmra.mrb[0].mxu1 %v5835_v34  ;;  %v6598_v34 = vld [vmem:[#allocation26_spill] sm:$0xff] }
  0xfa   : > { %4475 = vmatmul.mubr.f32.gmra.mrb[16].mxu0 %v5684_v19  ;;  %4874 = vmatpush3.bf16.msra.mxu1 %v5373_v7  ;;  %v6596_v19 = vld [vmem:[#allocation25_spill] sm:$0xff]  ;;  %v6597_v7 = vld [vmem:[#allocation15_spill] sm:$0xff] }
  0xfb   : > { %4133 = vmatprep.mubr.f32.mxu1 %v6588_v43  ;;  %4477 = vmatprep.mubr.f32.mxu0 %v6589_v54  ;;  %v3393_v43 = vld [vmem:[%s5416_s28 + $0x13a] sm:$0xff]  ;;  %v3202_v54 = vld [vmem:[%s5416_s28 + $0x129] sm:$0xff] }
  0xfc   : > { %4867 = vmatprep.subr.bf16.mxu1 %v6590_v61 }
  0xfd   : > { %4134 = vmatmul.mubr.f32.gmra.mrb[2].mxu1 %v6591_v4  ;;  %v3203_v4 = vld [vmem:[%s5416_s28 + $0x139] sm:$0xff] }
  0xfe   : > { %4478 = vmatmul.mubr.f32.gmra.mrb[18].mxu0 %v6592_v10  ;;  %4136 = vmatprep.mubr.f32.mxu1 %v6593_v53  ;;  %v3395_v10 = vld [vmem:[%s5416_s28 + $0x152] sm:$0xff]  ;;  %v3204_v53 = vld [vmem:[%s5416_s28 + $0x141] sm:$0xff] }
  0xff   : > { %4480 = vmatprep.mubr.f32.mxu0 %v6594_v13  ;;  %4875 = vmatpush3.bf16.msra.mxu1 %v6590_v61  ;;  %v3394_v61 = vld [vmem:[%s5416_s28 + $0x142] sm:$0xff]  ;;  %v3396_v13 = vld [vmem:[%s5416_s28 + $0x15a] sm:$0xff] }
 0x100   : > { %4868 = vmatprep.subr.bf16.mxu1 %v6595_v24 }
 0x101   : > { %4137 = vmatmul.mubr.f32.gmra.mrb[4].mxu1 %v6596_v19  ;;  %v3397_v19 = vld [vmem:[%s5416_s28 + $0x16a] sm:$0xff] }
 0x102   : > { %4481 = vmatmul.mubr.f32.gmra.mrb[20].mxu0 %v6597_v7  ;;  %4139 = vmatprep.mubr.f32.mxu1 %v6598_v34  ;;  %v3206_v7 = vld [vmem:[%s5416_s28 + $0x159] sm:$0xff] }
 0x103   : > { %4483 = vmatprep.mubr.f32.mxu0 %v6599_v9  ;;  %4876 = vmatpush3.bf16.msra.mxu1 %v6595_v24  ;;  %v3205_v24 = vld [vmem:[%s5416_s28 + $0x151] sm:$0xff]  ;;  %v3207_v9 = vld [vmem:[%s5416_s28 + $0x169] sm:$0xff] }
 0x104   : > { %4869 = vmatprep.subr.bf16.mxu1 %v6600_v49  ;;  %v3398_v34 = vld [vmem:[%s5416_s28 + $0x172] sm:$0xff] }
 0x105   : > { %4140 = vmatmul.mubr.f32.gmra.mrb[6].mxu1 %v6601_v37  ;;  %v3208_v37 = vld [vmem:[%s5416_s28 + $0x171] sm:$0xff] }
 0x106   : > { %4484 = vmatmul.mubr.f32.gmra.mrb[22].mxu0 %v6602_v38  ;;  %4142 = vmatprep.mubr.f32.mxu1 %v6603_v23  ;;  %v3400_v38 = vld [vmem:[%s5416_s28 + $0x18a] sm:$0xff]  ;;  %v3401_v23 = vld [vmem:[%s5416_s28 + $0x19a] sm:$0xff] }
 0x107   : > { %4486 = vmatprep.mubr.f32.mxu0 %v6604_v40  ;;  %4877 = vmatpush3.bf16.msra.mxu1 %v6600_v49  ;;  %v3399_v49 = vld [vmem:[%s5416_s28 + $0x182] sm:$0xff] }
 0x108   : > { %4870 = vmatprep.subr.bf16.mxu1 %v6605_v42  ;;  %v3402_v40 = vld [vmem:[%s5416_s28 + $0x1a2] sm:$0xff] }
 0x109   : > { %4143 = vmatmul.mubr.f32.gmra.mrb[8].mxu1 %v6606_v46 }
 0x10a   : > { %4487 = vmatmul.mubr.f32.gmra.mrb[24].mxu0 %v6607_v48  ;;  %4145 = vmatprep.mubr.f32.mxu1 %v6608_v52 }
 0x10b   : > { %4489 = vmatprep.mubr.f32.mxu0 %v6609_v62  ;;  %4878 = vmatpush3.bf16.msra.mxu1 %v6605_v42 }
 0x10c   : > { %4871 = vmatprep.subr.bf16.mxu1 %v6610_v3 }
 0x10d   : > { %4146 = vmatmul.mubr.f32.gmra.mrb[10].mxu1 %v6611_v57 }
 0x10e   : > { %4490 = vmatmul.mubr.f32.gmra.mrb[26].mxu0 %v6612_v29  ;;  %4148 = vmatprep.mubr.f32.mxu1 %v6613_v0 }
 0x10f   : > { %4492 = vmatprep.mubr.f32.mxu0 %v6294_v55  ;;  %4879 = vmatpush3.bf16.msra.mxu1 %v6610_v3 }
 0x110   : > { %4872 = vmatprep.subr.bf16.mxu1 %v6614_v6 }
 0x111   : > { %4149 = vmatmul.mubr.f32.gmra.mrb[12].mxu1 %v6615_v16 }
 0x112   : > { %4493 = vmatmul.mubr.f32.gmra.mrb[28].mxu0 %v6302_v5  ;;  %4151 = vmatprep.mubr.f32.mxu1 %v6616_v2 }
 0x113   : > { %4495 = vmatprep.mubr.f32.mxu0 %v3353_v11  ;;  %4880 = vmatpush3.bf16.msra.mxu1 %v6614_v6 }
 0x114   : > { %4873 = vmatprep.subr.bf16.mxu1 %v6617_v25 }
 0x115   : > { %4152 = vmatmul.mubr.f32.gmra.mrb[14].mxu1 %v6618_v20 }
 0x116   : > { %4496 = vmatmul.mubr.f32.gmra.mrb[30].mxu0 %v3354_v18  ;;  %4154 = vmatprep.mubr.f32.mxu1 %v5987_v17  ;;  %v3376_v17 = vld [vmem:[%s5416_s28 + $0x6a] sm:$0xff] }
 0x117   : > { %4530 = vmatprep.mubr.f32.mxu0 %v3371_v14  ;;  %4881 = vmatpush3.bf16.msra.mxu1 %v6617_v25  ;;  %v6387_v25 = vld [vmem:[%s6515_s2] ss:$0 sm:$0xff] }
 0x119   : > { %4155 = vmatmul.mubr.f32.gmra.mrb[16].mxu1 %v6000_v39  ;;  %v3378_v39 = vld [vmem:[%s5416_s28 + $0x82] sm:$0xff] }
 0x11a   : > { %4531 = vmatmul.mubr.f32.vlgmr.msra.gmra.mrb[0].mxu0 %v3372_v41  ;;  %4157 = vmatprep.mubr.f32.mxu1 %v6005_v12  ;;  %v3379_v12 = vld [vmem:[%s5416_s28 + $0x92] sm:$0xff] }
 0x11b   : > { %4533 = vmatprep.mubr.f32.mxu0 %v3373_v45 }
 0x11d   : > { %4158 = vmatmul.mubr.f32.gmra.mrb[18].mxu1 %v6017_v8  ;;  %v3380_v8 = vld [vmem:[%s5416_s28 + $0x9a] sm:$0xff] }
 0x11e   : > { %4534 = vmatmul.mubr.f32.gmra.mrb[2].mxu0 %v3374_v44  ;;  %4160 = vmatprep.mubr.f32.mxu1 %v6021_v36  ;;  %v3381_v36 = vld [vmem:[%s5416_s28 + $0xaa] sm:$0xff] }
 0x11f   : > { %4536 = vmatprep.mubr.f32.mxu0 %v3375_v28 }
 0x121   : > { %4161 = vmatmul.mubr.f32.gmra.mrb[20].mxu1 %v6033_v31  ;;  %v3382_v31 = vld [vmem:[%s5416_s28 + $0xb2] sm:$0xff] }
 0x122   : > { %4537 = vmatmul.mubr.f32.gmra.mrb[4].mxu0 %v3376_v17  ;;  %4163 = vmatprep.mubr.f32.mxu1 %v6037_v21  ;;  %v3383_v21 = vld [vmem:[%s5416_s28 + $0xc2] sm:$0xff] }
 0x123   : > { %4539 = vmatprep.mubr.f32.mxu0 %v3377_v50 }
 0x125   : > { %4164 = vmatmul.mubr.f32.gmra.mrb[22].mxu1 %v6049_v15  ;;  %v3384_v15 = vld [vmem:[%s5416_s28 + $0xca] sm:$0xff] }
 0x126   : > { %4540 = vmatmul.mubr.f32.gmra.mrb[6].mxu0 %v3378_v39  ;;  %4166 = vmatprep.mubr.f32.mxu1 %v6053_v59  ;;  %v3386_v59 = vld [vmem:[%s5416_s28 + $0xe2] sm:$0xff] }
 0x127   : > { %4542 = vmatprep.mubr.f32.mxu0 %v3379_v12 }
 0x129   : > { %4167 = vmatmul.mubr.f32.gmra.mrb[24].mxu1 %v6065_v51  ;;  %v3385_v51 = vld [vmem:[%s5416_s28 + $0xda] sm:$0xff] }
 0x12a   : > { %4543 = vmatmul.mubr.f32.gmra.mrb[8].mxu0 %v3380_v8  ;;  %4169 = vmatprep.mubr.f32.mxu1 %v6069_v32  ;;  %v3387_v32 = vld [vmem:[%s5416_s28 + $0xf2] sm:$0xff] }
 0x12b   : > { %4545 = vmatprep.mubr.f32.mxu0 %v3381_v36 }
 0x12d   : > { %4170 = vmatmul.mubr.f32.gmra.mrb[26].mxu1 %v6081_v56  ;;  %v3195_v56 = vld [vmem:[%s5416_s28 + $0xd9] sm:$0xff] }
 0x12e   : > { %4546 = vmatmul.mubr.f32.gmra.mrb[10].mxu0 %v3382_v31  ;;  %4172 = vmatprep.mubr.f32.mxu1 %v6085_v1  ;;  %v3196_v1 = vld [vmem:[%s5416_s28 + $0xe1] sm:$0xff] }
 0x12f   : > { %4548 = vmatprep.mubr.f32.mxu0 %v3383_v21 }
 0x131   : > { %4173 = vmatmul.mubr.f32.gmra.mrb[28].mxu1 %v6097_v47  ;;  %v3197_v47 = vld [vmem:[%s5416_s28 + $0xf1] sm:$0xff] }
 0x132   : > { %4549 = vmatmul.mubr.f32.gmra.mrb[12].mxu0 %v3384_v15  ;;  %4175 = vmatprep.mubr.f32.mxu1 %v6165_v22  ;;  %v3389_v22 = vld [vmem:[%s5416_s28 + $0x10a] sm:$0xff] }
 0x133   : > { %4551 = vmatprep.mubr.f32.mxu0 %v3385_v51 }
 0x135   : > { %4176 = vmatmul.mubr.f32.gmra.mrb[30].mxu1 %v6178_v30  ;;  %v3199_v30 = vld [vmem:[%s5416_s28 + $0x109] sm:$0xff]  ;;  %s199_s28 = sand.u32 1, %s5258_s13  }
 0x136   : > { %4552 = vmatmul.mubr.f32.gmra.mrb[14].mxu0 %v3386_v59  ;;  %4234 = vmatprep.mubr.f32.mxu1 %v3195_v56  ;;  %s3097_s29 = sshll.u32 %s199_s28, 8  ;;  %s6467_s15 = scalar_lea.sflag [#allocation3], %s199_s28 }
 0x137   : > { %4554 = vmatprep.mubr.f32.mxu0 %v3387_v32  ;;  %s6391_s5 = scalar_lea.vmem [#allocation2], %s3097_s29 }
 0x138   : > { %s2991_s7 = sshll.u32 %s6391_s5, 4  ;;  %s6460_s7 = int_to_ptr.vmem [resolvable:$true] %s2991_s7 }
 0x139   : > { %4235 = vmatmul.mubr.f32.vlgmr.msra.gmra.mrb[16].mxu1 %v3196_v1  ;;  %s5196_s11 = scalar_lea.vmem %s6460_s7, 4096  ;;  %p5203_p1 = scmp.lt.s32.totalorder %s6460_s7, %s5201_s19 }
 0x13a   : > { %4555 = vmatmul.mubr.f32.gmra.mrb[16].mxu0 %v3388_v58  ;;  %4237 = vmatprep.mubr.f32.mxu1 %v3197_v47  ;;  %p5197_p12 = scmp.ne.s32.totalorder %s6460_s7, %s5196_s11  ;;  %p5204_p2 = scmp.lt.s32.totalorder %s5202_s21, %s5196_s11 }
 0x13b   : > { %4557 = vmatprep.mubr.f32.mxu0 %v3389_v22 }
 0x13c   : > { %p5198_p13 = pnand %p5197_p12, %p5339_p4  ;;  %p5205_p3 = por %p5204_p2, %p5203_p1 }
 0x13d   : > { %4238 = vmatmul.mubr.f32.gmra.mrb[18].mxu1 %v3198_v63 }
 0x13e   : > { %4558 = vmatmul.mubr.f32.gmra.mrb[18].mxu0 %v3390_v35  ;;  %4240 = vmatprep.mubr.f32.mxu1 %v3199_v30  ;;  %p5199_p0 = pneg %p5198_p13 }
 0x13f   : > { %4560 = vmatprep.mubr.f32.mxu0 %v3391_v60 }
 0x140   : > { %p5206_p5 = pnand %p5205_p3, %p5199_p0 }
 0x141   : > { %4241 = vmatmul.mubr.f32.gmra.mrb[20].mxu1 %v3200_v26 }
 0x142   : > { %4561 = vmatmul.mubr.f32.gmra.mrb[20].mxu0 %v3392_v27  ;;  %4243 = vmatprep.mubr.f32.mxu1 %v3201_v33 }
 0x143   : > { %4563 = vmatprep.mubr.f32.mxu0 %v3393_v43 }
 0x145   : > { %4244 = vmatmul.mubr.f32.gmra.mrb[22].mxu1 %v3202_v54 }
 0x146   : > { %4564 = vmatmul.mubr.f32.gmra.mrb[22].mxu0 %v3394_v61  ;;  %4246 = vmatprep.mubr.f32.mxu1 %v3203_v4 }
 0x147   : > { %4566 = vmatprep.mubr.f32.mxu0 %v3395_v10 }
 0x149   : > { %4247 = vmatmul.mubr.f32.gmra.mrb[24].mxu1 %v3204_v53 }
 0x14a   : > { %4567 = vmatmul.mubr.f32.gmra.mrb[24].mxu0 %v3396_v13  ;;  %4249 = vmatprep.mubr.f32.mxu1 %v3205_v24 }
 0x14b   : > { %4569 = vmatprep.mubr.f32.mxu0 %v3397_v19 }
 0x14d   : > { %4250 = vmatmul.mubr.f32.gmra.mrb[26].mxu1 %v3206_v7 }
 0x14e   : > { %4570 = vmatmul.mubr.f32.gmra.mrb[26].mxu0 %v3398_v34  ;;  %4252 = vmatprep.mubr.f32.mxu1 %v3207_v9 }
 0x14f   : > { %4572 = vmatprep.mubr.f32.mxu0 %v3399_v49 }
 0x151   : > { %4253 = vmatmul.mubr.f32.gmra.mrb[28].mxu1 %v3208_v37 }
 0x152   : > { %4573 = vmatmul.mubr.f32.gmra.mrb[28].mxu0 %v3400_v38  ;;  %4255 = vmatprep.mubr.f32.mxu1 %v6294_v55 }
 0x153   : > { %4575 = vmatprep.mubr.f32.mxu0 %v3401_v23 }
 0x155   : > { %4256 = vmatmul.mubr.f32.gmra.mrb[30].mxu1 %v6302_v5 }
 0x156   : > { %4576 = vmatmul.mubr.f32.gmra.mrb[30].mxu0 %v3402_v40 }
 0x1cc   : > { %v4132_v42 = vpop.f32.mrb[0].mxu1 }
 0x1cd   : > { %v1183_v46 = vpop.f32.mrb[1].mxu1 }
 0x1d0   : > { %v4135_v48 = vpop.f32.mrb[2].mxu1 }
 0x1d1   : > { %v1193_v52 = vpop.f32.mrb[3].mxu1 }
 0x1d4   : > { %v4138_v62 = vpop.f32.mrb[4].mxu1 }
 0x1d5   : > { %v1203_v3 = vpop.f32.mrb[5].mxu1 }
 0x1d8   : > { %v4141_v57 = vpop.f32.mrb[6].mxu1 }
 0x1d9   : > { %v1213_v29 = vpop.f32.mrb[7].mxu1 }
 0x1dc   : > { %v4144_v0 = vpop.f32.mrb[8].mxu1 }
 0x1dd   : > { %v1223_v11 = vpop.f32.mrb[9].mxu1 }
 0x1e0   : > { %v4147_v6 = vpop.f32.mrb[10].mxu1 }
 0x1e1   : > { %v1233_v16 = vpop.f32.mrb[11].mxu1 }
 0x1e4   : > { %v4150_v55 = vpop.f32.mrb[12].mxu1 }
 0x1e5   : > { %v1243_v2 = vpop.f32.mrb[13].mxu1 }
 0x1e8   : > { %v4153_v18 = vpop.f32.mrb[14].mxu1 }
 0x1e9   : > { %v6379_v14 = vpop.f32.mrb[15].mxu1 }
 0x1ed   : > { %v4532_v5 = vpop.f32.mrb[0].mxu0 }
 0x1ee   : > { %v4882_v20 = vadd.f32 %v4532_v5, %v4132_v42  ;;  %v2714_v41 = vpop.f32.mrb[1].mxu0 }
 0x1ef   : > { %v4883_v45 = vadd.f32 %v2714_v41, %v1183_v46 }
 0x1f0   : > { %v2913_v44 = vadd.f32 %v4882_v20, %v6387_v25 }
 0x1f1   : > { %v2912_v28 = vadd.f32 %v4883_v45, %v6387_v25  ;;  %v4535_v17 = vpop.f32.mrb[2].mxu0 }
 0x1f2   : > { %2945 = vst [vmem:[%s6391_s5 + $0x8] sm:$0xff] %v2913_v44  ;;  %v4884_v50 = vadd.f32 %v4535_v17, %v4135_v48  ;;  %v2724_v39 = vpop.f32.mrb[3].mxu0 }
 0x1f3   : > { %2944 = vst [vmem:[%s6391_s5] sm:$0xff] %v2912_v28  ;;  %v4885_v12 = vadd.f32 %v2724_v39, %v1193_v52 }
 0x1f4   : > { %v2915_v8 = vadd.f32 %v4884_v50, %v6387_v25 }
 0x1f5   : > { %v2914_v36 = vadd.f32 %v4885_v12, %v6387_v25  ;;  %v4538_v31 = vpop.f32.mrb[4].mxu0 }
 0x1f6   : > { %2947 = vst [vmem:[%s6391_s5 + $0x18] sm:$0xff] %v2915_v8  ;;  %v4886_v21 = vadd.f32 %v4538_v31, %v4138_v62  ;;  %v2734_v15 = vpop.f32.mrb[5].mxu0 }
 0x1f7   : > { %2946 = vst [vmem:[%s6391_s5 + $0x10] sm:$0xff] %v2914_v36  ;;  %v4887_v51 = vadd.f32 %v2734_v15, %v1203_v3 }
 0x1f8   : > { %v2917_v59 = vadd.f32 %v4886_v21, %v6387_v25 }
 0x1f9   : > { %v2916_v56 = vadd.f32 %v4887_v51, %v6387_v25  ;;  %v4541_v32 = vpop.f32.mrb[6].mxu0 }
 0x1fa   : > { %2949 = vst [vmem:[%s6391_s5 + $0x28] sm:$0xff] %v2917_v59  ;;  %v4888_v1 = vadd.f32 %v4541_v32, %v4141_v57  ;;  %v2744_v58 = vpop.f32.mrb[7].mxu0 }
 0x1fb   : > { %2948 = vst [vmem:[%s6391_s5 + $0x20] sm:$0xff] %v2916_v56  ;;  %v4889_v47 = vadd.f32 %v2744_v58, %v1213_v29 }
 0x1fc   : > { %v2919_v22 = vadd.f32 %v4888_v1, %v6387_v25 }
 0x1fd   : > { %v2918_v63 = vadd.f32 %v4889_v47, %v6387_v25  ;;  %v4544_v35 = vpop.f32.mrb[8].mxu0 }
 0x1fe   : > { %2951 = vst [vmem:[%s6391_s5 + $0x38] sm:$0xff] %v2919_v22  ;;  %v4890_v30 = vadd.f32 %v4544_v35, %v4144_v0  ;;  %v2754_v60 = vpop.f32.mrb[9].mxu0 }
 0x1ff   : > { %2950 = vst [vmem:[%s6391_s5 + $0x30] sm:$0xff] %v2918_v63  ;;  %v4891_v26 = vadd.f32 %v2754_v60, %v1223_v11 }
 0x200   : > { %v2921_v27 = vadd.f32 %v4890_v30, %v6387_v25 }
 0x201   : > { %v2920_v33 = vadd.f32 %v4891_v26, %v6387_v25  ;;  %v4547_v43 = vpop.f32.mrb[10].mxu0 }
 0x202   : > { %2953 = vst [vmem:[%s6391_s5 + $0x48] sm:$0xff] %v2921_v27  ;;  %v4892_v54 = vadd.f32 %v4547_v43, %v4147_v6  ;;  %v2764_v61 = vpop.f32.mrb[11].mxu0 }
 0x203   : > { %2952 = vst [vmem:[%s6391_s5 + $0x40] sm:$0xff] %v2920_v33  ;;  %v4893_v4 = vadd.f32 %v2764_v61, %v1233_v16 }
 0x204   : > { %v2923_v10 = vadd.f32 %v4892_v54, %v6387_v25 }
 0x205   : > { %v2922_v53 = vadd.f32 %v4893_v4, %v6387_v25  ;;  %v4550_v13 = vpop.f32.mrb[12].mxu0 }
 0x206   : > { %2955 = vst [vmem:[%s6391_s5 + $0x58] sm:$0xff] %v2923_v10  ;;  %v4894_v24 = vadd.f32 %v4550_v13, %v4150_v55  ;;  %v2774_v19 = vpop.f32.mrb[13].mxu0 }
 0x207   : > { %2954 = vst [vmem:[%s6391_s5 + $0x50] sm:$0xff] %v2922_v53  ;;  %v4895_v7 = vadd.f32 %v2774_v19, %v1243_v2 }
 0x208   : > { %v2925_v34 = vadd.f32 %v4894_v24, %v6387_v25 }
 0x209   : > { %v2924_v9 = vadd.f32 %v4895_v7, %v6387_v25  ;;  %v4553_v49 = vpop.f32.mrb[14].mxu0 }
 0x20a   : > { %2957 = vst [vmem:[%s6391_s5 + $0x68] sm:$0xff] %v2925_v34  ;;  %v4896_v37 = vadd.f32 %v4553_v49, %v4153_v18  ;;  %v2784_v38 = vpop.f32.mrb[15].mxu0 }
 0x20b   : > { %2956 = vst [vmem:[%s6391_s5 + $0x60] sm:$0xff] %v2924_v9  ;;  %v4897_v23 = vadd.f32 %v2784_v38, %v6379_v14 }
 0x20c   : > { %v2927_v40 = vadd.f32 %v4896_v37, %v6387_v25  ;;  %v4236_v42 = vpop.f32.mrb[16].mxu1 }
 0x20d   : > { %v2926_v46 = vadd.f32 %v4897_v23, %v6387_v25  ;;  %v4556_v48 = vpop.f32.mrb[16].mxu0  ;;  %v1569_v52 = vpop.f32.mrb[17].mxu1 }
 0x20e   : > { %2959 = vst [vmem:[%s6391_s5 + $0x78] sm:$0xff] %v2927_v40  ;;  %v4898_v62 = vadd.f32 %v4556_v48, %v4236_v42  ;;  %v2794_v3 = vpop.f32.mrb[17].mxu0 }
 0x20f   : > { %2958 = vst [vmem:[%s6391_s5 + $0x70] sm:$0xff] %v2926_v46  ;;  %v4899_v57 = vadd.f32 %v2794_v3, %v1569_v52 }
 0x210   : > { %v2929_v29 = vadd.f32 %v4898_v62, %v6387_v25  ;;  %v4239_v0 = vpop.f32.mrb[18].mxu1 }
 0x211   : > { %v2928_v11 = vadd.f32 %v4899_v57, %v6387_v25  ;;  %v4559_v6 = vpop.f32.mrb[18].mxu0  ;;  %v1579_v16 = vpop.f32.mrb[19].mxu1 }
 0x212   : > { %2961 = vst [vmem:[%s6391_s5 + $0x88] sm:$0xff] %v2929_v29  ;;  %v4900_v55 = vadd.f32 %v4559_v6, %v4239_v0  ;;  %v2804_v2 = vpop.f32.mrb[19].mxu0 }
 0x213   : > { %2960 = vst [vmem:[%s6391_s5 + $0x80] sm:$0xff] %v2928_v11  ;;  %v4901_v18 = vadd.f32 %v2804_v2, %v1579_v16 }
 0x214   : > { %v2931_v14 = vadd.f32 %v4900_v55, %v6387_v25  ;;  %v4242_v5 = vpop.f32.mrb[20].mxu1 }
 0x215   : > { %v2930_v20 = vadd.f32 %v4901_v18, %v6387_v25  ;;  %v4562_v41 = vpop.f32.mrb[20].mxu0  ;;  %v1589_v45 = vpop.f32.mrb[21].mxu1 }
 0x216   : > { %2963 = vst [vmem:[%s6391_s5 + $0x98] sm:$0xff] %v2931_v14  ;;  %v4902_v44 = vadd.f32 %v4562_v41, %v4242_v5  ;;  %v2814_v28 = vpop.f32.mrb[21].mxu0 }
 0x217   : > { %2962 = vst [vmem:[%s6391_s5 + $0x90] sm:$0xff] %v2930_v20  ;;  %v4903_v17 = vadd.f32 %v2814_v28, %v1589_v45 }
 0x218   : > { %v2933_v50 = vadd.f32 %v4902_v44, %v6387_v25  ;;  %v4245_v39 = vpop.f32.mrb[22].mxu1 }
 0x219   : > { %v2932_v12 = vadd.f32 %v4903_v17, %v6387_v25  ;;  %v4565_v8 = vpop.f32.mrb[22].mxu0  ;;  %v1599_v36 = vpop.f32.mrb[23].mxu1 }
 0x21a   : > { %2965 = vst [vmem:[%s6391_s5 + $0xa8] sm:$0xff] %v2933_v50  ;;  %v4904_v31 = vadd.f32 %v4565_v8, %v4245_v39  ;;  %v2824_v21 = vpop.f32.mrb[23].mxu0 }
 0x21b   : > { %2964 = vst [vmem:[%s6391_s5 + $0xa0] sm:$0xff] %v2932_v12  ;;  %v4905_v15 = vadd.f32 %v2824_v21, %v1599_v36 }
 0x21c   : > { %v2935_v51 = vadd.f32 %v4904_v31, %v6387_v25  ;;  %v4248_v59 = vpop.f32.mrb[24].mxu1 }
 0x21d   : > { %v2934_v56 = vadd.f32 %v4905_v15, %v6387_v25  ;;  %v4568_v32 = vpop.f32.mrb[24].mxu0  ;;  %v1609_v1 = vpop.f32.mrb[25].mxu1 }
 0x21e   : > { %2967 = vst [vmem:[%s6391_s5 + $0xb8] sm:$0xff] %v2935_v51  ;;  %v4906_v58 = vadd.f32 %v4568_v32, %v4248_v59  ;;  %v2834_v47 = vpop.f32.mrb[25].mxu0 }
 0x21f   : > { %2966 = vst [vmem:[%s6391_s5 + $0xb0] sm:$0xff] %v2934_v56  ;;  %v4907_v22 = vadd.f32 %v2834_v47, %v1609_v1 }
 0x220   : > { %v2937_v63 = vadd.f32 %v4906_v58, %v6387_v25  ;;  %v4251_v35 = vpop.f32.mrb[26].mxu1 }
 0x221   : > { %v2936_v30 = vadd.f32 %v4907_v22, %v6387_v25  ;;  %v4571_v60 = vpop.f32.mrb[26].mxu0  ;;  %v1619_v26 = vpop.f32.mrb[27].mxu1 }
 0x222   : > { %2969 = vst [vmem:[%s6391_s5 + $0xc8] sm:$0xff] %v2937_v63  ;;  %v4908_v27 = vadd.f32 %v4571_v60, %v4251_v35  ;;  %v2844_v33 = vpop.f32.mrb[27].mxu0 }
 0x223   : > { %2968 = vst [vmem:[%s6391_s5 + $0xc0] sm:$0xff] %v2936_v30  ;;  %v4909_v43 = vadd.f32 %v2844_v33, %v1619_v26 }
 0x224   : > { %v2939_v54 = vadd.f32 %v4908_v27, %v6387_v25  ;;  %v4254_v61 = vpop.f32.mrb[28].mxu1 }
 0x225   : > { %v2938_v4 = vadd.f32 %v4909_v43, %v6387_v25  ;;  %v4574_v10 = vpop.f32.mrb[28].mxu0  ;;  %v1629_v53 = vpop.f32.mrb[29].mxu1 }
 0x226   : > { %2971 = vst [vmem:[%s6391_s5 + $0xd8] sm:$0xff] %v2939_v54  ;;  %v4910_v13 = vadd.f32 %v4574_v10, %v4254_v61  ;;  %v2854_v24 = vpop.f32.mrb[29].mxu0 }
 0x227   : > { %2970 = vst [vmem:[%s6391_s5 + $0xd0] sm:$0xff] %v2938_v4  ;;  %v4911_v19 = vadd.f32 %v2854_v24, %v1629_v53 }
 0x228   : > { %v2941_v7 = vadd.f32 %v4910_v13, %v6387_v25  ;;  %v4257_v34 = vpop.f32.mrb[30].mxu1 }
 0x229   : > { %v2940_v9 = vadd.f32 %v4911_v19, %v6387_v25  ;;  %v4577_v49 = vpop.f32.mrb[30].mxu0  ;;  %v1639_v37 = vpop.f32.mrb[31].mxu1 }
 0x22a   : > { %2973 = vst [vmem:[%s6391_s5 + $0xe8] sm:$0xff] %v2941_v7  ;;  %v4912_v38 = vadd.f32 %v4577_v49, %v4257_v34  ;;  %v2864_v23 = vpop.f32.mrb[31].mxu0 }
 0x22b   : > { %2972 = vst [vmem:[%s6391_s5 + $0xe0] sm:$0xff] %v2940_v9  ;;  %v4913_v40 = vadd.f32 %v2864_v23, %v1639_v37 }
 0x22c   : > { %v2943_v42 = vadd.f32 %v4912_v38, %v6387_v25 }
 0x22d   : > { %v2942_v46 = vadd.f32 %v4913_v40, %v6387_v25 }
 0x22e   : > { %2975 = vst [vmem:[%s6391_s5 + $0xf8] sm:$0xff] %v2943_v42 }
 0x22f   : > { %2974 = vst [vmem:[%s6391_s5 + $0xf0] sm:$0xff] %v2942_v46 }
 0x230   : > { %5209 = shalt.err (!%p5206_p5)
}
 0x231   : > { %s5210_s23 = scalar_lea.hbm %s6458_s10, 4096  ;;  %s5214_s28 = scalar_lea.hbm %s6516_s3, 8192 }
 0x232   : > { %p5211_p6 = scmp.ne.s32.totalorder %s6458_s10, %s5210_s23  ;;  %p5215_p10 = scmp.lt.u32.totalorder %s6458_s10, %s6516_s3 }
 0x233   : > { %p5216_p11 = scmp.lt.u32.totalorder %s5214_s28, %s5210_s23  ;;  %p5218_p13 = scmp.lt.u32.totalorder %s5210_s23, %s6458_s10 }
 0x234   : > { %p5212_p7 = pnand %p5211_p6, %p5339_p4 }
 0x235   : > { %p5217_p12 = por %p5216_p11, %p5215_p10 }
 0x236   : > { %p5213_p9 = pneg %p5212_p7 }
 0x237   : > { %p5219_p0 = por %p5218_p13, %p5217_p12 }
 0x239   : > { %p5220_p1 = pnand %p5219_p0, %p5213_p9 }
 0x23b   : > { %5223 = shalt.err (!%p5220_p1)
}
 0x23c   : > { %s5277_s4 = smov 128   ;;  %s5278_s5 = smov 8  }
 0x23d   : > { %5139 = dma.vmem_to_hbm [thread:$0]  (%p5339_p4), %s6460_s7, 4096, %s6458_s10, %s6467_s15, %s5277_s4, %s5277_s4, %s5278_s5  }
 0x23e PF: > { %p5145_p2 = scmp.ge.s32.totalorder %s5274_s17, 2  ;;  %s3006_s6 = sand.u32 1, %s5254_s12  }
 0x23f   : > { %s3007_s8 = scalar_lea.sflag [#allocation3], %s3006_s6 }
 0x240   : > { %p5142_p3 = pnand %p5145_p2, %p5346_p8 }
 0x242   : > { %5249 = dma.done.wait (!%p5142_p3), %s3007_s8, 4096  }
 0x243   : > { %5251 = vsyncadd (!%p5142_p3), %s3007_s8, 4294963200  ;;  %s16_s17 = sadd.s32 1, %s5274_s17   ;;  %s6619_s12 = smov %s5258_s13 }
 0x244   : > { %p13_p5 = scmp.ge.s32.totalorder %s16_s17, 4   ;;  %s6620_s13 = smov %s5262_s14 }
 0x245   : > { %s6621_s14 = smov %s5352_s25  ;;  %s6622_s15 = smov %s5270_s16 }
 0x246   : > { %s6623_s16 = smov %s6625_s20  ;;  %15 = sbr.rel (!%p13_p5) target bundleno = 4 (0x4), region = 83 }
 0x24d   :  { %3012 = vsyncpa [#allocation3], 1 }
 0x24e   :  { %3014 = vsyncpa [#allocation3 + $0x1], 1 }

</bundles_post_ra>
